<compile_context>
chip_gen: v6e
topology: v6e:2x2x1
jax: 0.10.0
libtpu: 0.0.40
codegen_flags: <defaults>
</compile_context>

<pallas_src>
import functools

import jax
import jax.numpy as jnp
from jax.experimental import pallas as pl
from jax.experimental.pallas import tpu as pltpu

EPS = 1e-5
# Matmul operand dtype.  float32 keeps the <1e-3 check tight; switch to jnp.bfloat16 for
# 2x MXU throughput / half the tap-slab VMEM (accumulation and BN stats stay float32).
MATMUL_DTYPE = jnp.float32


# ---------------------------------------------------------------------------
# Kernel 1: conv3x3 (9 taps folded into one K=9*C matmul) + BN partial stats
# ---------------------------------------------------------------------------
def _conv_stats_kernel(x_ref, w_ref, mask_ref, y_ref, sum_ref, sq_ref, taps_ref,
                       *, ch, ncomp, wp):
    # x_ref   : (1, ch, L)        flat zero-padded input image (spatial on lanes)
    # w_ref   : (cout, 9*ch)      folded conv weights
    # mask_ref: (1, ncomp)        1.0 at valid columns, 0.0 at width-padding columns
    # y_ref   : (1, cout, ncomp)  pre-BN conv output (band layout: rows 1..H, all Wp cols)
    # sum_ref/sq_ref: (1, cout, 1) per-image partial sum / sum-of-squares
    # taps_ref: (9*ch, ncomp)     VMEM scratch tap slab (tap axis folded next to channels)
    for k in range(9):
        ky, kx = k // 3, k % 3
        d = ky * wp + kx
        taps_ref[k * ch:(k + 1) * ch, :] = (
            x_ref[0, :, d:d + ncomp].astype(taps_ref.dtype))
    acc = jnp.dot(w_ref[...], taps_ref[...], preferred_element_type=jnp.float32)
    y_ref[0] = acc.astype(y_ref.dtype)
    am = acc * mask_ref[...]
    sum_ref[0] = jnp.sum(am, axis=1, keepdims=True)
    sq_ref[0] = jnp.sum(am * am, axis=1, keepdims=True)


# ---------------------------------------------------------------------------
# Kernel 2: BN1+ReLU (folded scale/shift) fused into conv2 tap build, + BN2 stats
# ---------------------------------------------------------------------------
def _bn_relu_conv_stats_kernel(y1_ref, w_ref, scale_ref, shift_ref, mask_ref,
                               y2_ref, sum_ref, sq_ref, xpad_ref, taps_ref,
                               *, ch, ncomp, wp):
    # y1_ref: (1, ch, ncomp) pre-BN conv1 output; scale/shift: (ch, 1); mask: (1, ncomp)
    # xpad_ref: (ch, L) VMEM scratch re-building the zero-padded flat activation
    a = jnp.maximum(y1_ref[0] * scale_ref[...] + shift_ref[...], 0.0) * mask_ref[...]
    xpad_ref[...] = jnp.zeros(xpad_ref.shape, xpad_ref.dtype)
    xpad_ref[:, wp + 1:wp + 1 + ncomp] = a.astype(xpad_ref.dtype)
    for k in range(9):
        ky, kx = k // 3, k % 3
        d = ky * wp + kx
        taps_ref[k * ch:(k + 1) * ch, :] = xpad_ref[:, d:d + ncomp]
    acc = jnp.dot(w_ref[...], taps_ref[...], preferred_element_type=jnp.float32)
    y2_ref[0] = acc.astype(y2_ref.dtype)
    am = acc * mask_ref[...]
    sum_ref[0] = jnp.sum(am, axis=1, keepdims=True)
    sq_ref[0] = jnp.sum(am * am, axis=1, keepdims=True)


# ---------------------------------------------------------------------------
# Kernel 3: BN2 + residual add + ReLU (elementwise, band layout)
# ---------------------------------------------------------------------------
def _bn_add_relu_kernel(y2_ref, x_ref, scale_ref, shift_ref, o_ref, *, ncomp, wp):
    identity = x_ref[0, :, wp + 1:wp + 1 + ncomp]
    y = y2_ref[0] * scale_ref[...] + shift_ref[...] + identity
    o_ref[0] = jnp.maximum(y, 0.0).astype(o_ref.dtype)


# ---------------------------------------------------------------------------
# pallas_call wrappers
# ---------------------------------------------------------------------------
def _conv_stats(x_flat, wf, mask, *, ncomp, wp):
    b, ch, l = x_flat.shape
    cout = wf.shape[0]
    kernel = functools.partial(_conv_stats_kernel, ch=ch, ncomp=ncomp, wp=wp)
    return pl.pallas_call(
        kernel,
        grid=(b,),
        in_specs=[
            pl.BlockSpec((1, ch, l), lambda i: (i, 0, 0)),
            pl.BlockSpec((cout, 9 * ch), lambda i: (0, 0)),
            pl.BlockSpec((1, ncomp), lambda i: (0, 0)),
        ],
        out_specs=(
            pl.BlockSpec((1, cout, ncomp), lambda i: (i, 0, 0)),
            pl.BlockSpec((1, cout, 1), lambda i: (i, 0, 0)),
            pl.BlockSpec((1, cout, 1), lambda i: (i, 0, 0)),
        ),
        out_shape=(
            jax.ShapeDtypeStruct((b, cout, ncomp), jnp.float32),
            jax.ShapeDtypeStruct((b, cout, 1), jnp.float32),
            jax.ShapeDtypeStruct((b, cout, 1), jnp.float32),
        ),
        scratch_shapes=[pltpu.VMEM((9 * ch, ncomp), MATMUL_DTYPE)],
        compiler_params=pltpu.CompilerParams(dimension_semantics=("parallel",)),
    )(x_flat, wf, mask)


def _bn_relu_conv_stats(y1_pre, wf, scale, shift, mask, *, ncomp, wp, l):
    b, ch, _ = y1_pre.shape
    cout = wf.shape[0]
    kernel = functools.partial(_bn_relu_conv_stats_kernel, ch=ch, ncomp=ncomp, wp=wp)
    return pl.pallas_call(
        kernel,
        grid=(b,),
        in_specs=[
            pl.BlockSpec((1, ch, ncomp), lambda i: (i, 0, 0)),
            pl.BlockSpec((cout, 9 * ch), lambda i: (0, 0)),
            pl.BlockSpec((ch, 1), lambda i: (0, 0)),
            pl.BlockSpec((ch, 1), lambda i: (0, 0)),
            pl.BlockSpec((1, ncomp), lambda i: (0, 0)),
        ],
        out_specs=(
            pl.BlockSpec((1, cout, ncomp), lambda i: (i, 0, 0)),
            pl.BlockSpec((1, cout, 1), lambda i: (i, 0, 0)),
            pl.BlockSpec((1, cout, 1), lambda i: (i, 0, 0)),
        ),
        out_shape=(
            jax.ShapeDtypeStruct((b, cout, ncomp), jnp.float32),
            jax.ShapeDtypeStruct((b, cout, 1), jnp.float32),
            jax.ShapeDtypeStruct((b, cout, 1), jnp.float32),
        ),
        scratch_shapes=[
            pltpu.VMEM((ch, l), MATMUL_DTYPE),
            pltpu.VMEM((9 * ch, ncomp), MATMUL_DTYPE),
        ],
        compiler_params=pltpu.CompilerParams(dimension_semantics=("parallel",)),
    )(y1_pre, wf, scale, shift, mask)


def _bn_add_relu(y2_pre, x_flat, scale, shift, *, ncomp, wp):
    b, ch, _ = y2_pre.shape
    l = x_flat.shape[2]
    kernel = functools.partial(_bn_add_relu_kernel, ncomp=ncomp, wp=wp)
    return pl.pallas_call(
        kernel,
        grid=(b,),
        in_specs=[
            pl.BlockSpec((1, ch, ncomp), lambda i: (i, 0, 0)),
            pl.BlockSpec((1, ch, l), lambda i: (i, 0, 0)),
            pl.BlockSpec((ch, 1), lambda i: (0, 0)),
            pl.BlockSpec((ch, 1), lambda i: (0, 0)),
        ],
        out_specs=pl.BlockSpec((1, ch, ncomp), lambda i: (i, 0, 0)),
        out_shape=jax.ShapeDtypeStruct((b, ch, ncomp), jnp.float32),
        compiler_params=pltpu.CompilerParams(dimension_semantics=("parallel",)),
    )(y2_pre, x_flat, scale, shift)


# ---------------------------------------------------------------------------
# Forward pass (wrapper glue: one pad, weight folding, tiny per-channel reductions)
# ---------------------------------------------------------------------------
def residual_block_forward(x_nchw, params):
    """ResidualBlock forward (stride=1, downsample=None), training-mode BatchNorm."""
    w1, g1, b1 = params["w1"], params["g1"], params["b1"]
    w2, g2, b2 = params["w2"], params["g2"], params["b2"]
    bsz, cin, h, w = x_nchw.shape
    cout = w1.shape[0]
    assert cin == cout, "identity shortcut requires in_channels == out_channels"

    hp, wp = h + 2, w + 2
    l = hp * wp + 2          # flat padded spatial extent (+1 halo word at each end)
    ncomp = h * wp           # computed band: padded rows 1..H, all Wp columns

    x = x_nchw.astype(jnp.float32)
    # Pad ONCE (no 9x im2col duplication): (B,C,H,W) -> (B,C,Hp,Wp) -> flat (B,C,L).
    x_flat = jnp.pad(
        jnp.pad(x, ((0, 0), (0, 0), (1, 1), (1, 1))).reshape(bsz, cin, hp * wp),
        ((0, 0), (0, 0), (1, 1)))

    # Fold the 3x3 taps into the contraction dim: OIHW -> (O, ky, kx, I) -> (O, 9*I).
    w1f = jnp.transpose(w1, (0, 2, 3, 1)).reshape(cout, 9 * cin).astype(MATMUL_DTYPE)
    w2f = jnp.transpose(w2, (0, 2, 3, 1)).reshape(cout, 9 * cout).astype(MATMUL_DTYPE)

    # Valid-column mask for the band layout (zero at the width-padding columns).
    col = jnp.arange(ncomp, dtype=jnp.int32) % wp
    mask = ((col >= 1) & (col <= w)).astype(jnp.float32).reshape(1, ncomp)

    n_valid = float(bsz * h * w)

    # --- stage 1: conv1 + BN1 batch statistics (single pass: sum / sum-of-squares) ---
    y1_pre, s1, q1 = _conv_stats(x_flat, w1f, mask, ncomp=ncomp, wp=wp)
    mean1 = jnp.sum(s1, axis=0) / n_valid                       # (cout, 1)
    var1 = jnp.sum(q1, axis=0) / n_valid - mean1 * mean1        # biased variance
    scale1 = g1.reshape(cout, 1) * jax.lax.rsqrt(var1 + EPS)
    shift1 = b1.reshape(cout, 1) - mean1 * scale1

    # --- stage 2: BN1+ReLU fused into conv2 tap construction, + BN2 statistics ---
    y2_pre, s2, q2 = _bn_relu_conv_stats(y1_pre, w2f, scale1, shift1, mask,
                                         ncomp=ncomp, wp=wp, l=l)
    mean2 = jnp.sum(s2, axis=0) / n_valid
    var2 = jnp.sum(q2, axis=0) / n_valid - mean2 * mean2
    scale2 = g2.reshape(cout, 1) * jax.lax.rsqrt(var2 + EPS)
    shift2 = b2.reshape(cout, 1) - mean2 * scale2

    # --- stage 3: BN2 + residual add + ReLU (elementwise) ---
    out_band = _bn_add_relu(y2_pre, x_flat, scale2, shift2, ncomp=ncomp, wp=wp)

    # Drop the width-padding columns of the band layout -> NCHW (no transposes needed).
    return out_band.reshape(bsz, cout, h, wp)[:, :, :, 1:w + 1]


# ---------------------------------------------------------------------------
# Pure-JAX reference (correctness check only)
# ---------------------------------------------------------------------------
def _ref_forward(x, w1, g1, b1, w2, g2, b2):
    def conv(y, wt):
        return jax.lax.conv_general_dilated(
            y, wt, window_strides=(1, 1), padding=((1, 1), (1, 1)),
            dimension_numbers=("NCHW", "OIHW", "NCHW"))

    def bn(y, g, b):
        mean = jnp.mean(y, axis=(0, 2, 3), keepdims=True)
        var = jnp.mean((y - mean) ** 2, axis=(0, 2, 3), keepdims=True)
        return ((y - mean) * jax.lax.rsqrt(var + EPS)
                * g.reshape(1, -1, 1, 1) + b.reshape(1, -1, 1, 1))

    out = jnp.maximum(bn(conv(x, w1), g1, b1), 0.0)
    out = bn(conv(out, w2), g2, b2) + x
    return jnp.maximum(out, 0.0)


# ---------------------------------------------------------------------------
if __name__ == "__main__":
    B, C, H, W = 2, 4, 16, 16
    key = jax.random.PRNGKey(0)
    kx, k1, k2, k3, k4, k5, k6 = jax.random.split(key, 7)

    x = jax.random.normal(kx, (B, C, H, W), dtype=jnp.float32)

    params = {
        # conv weights in torch OIHW layout, bias=False
        "w1": jax.random.normal(k1, (C, C, 3, 3), dtype=jnp.float32) * 0.2,
        "w2": jax.random.normal(k2, (C, C, 3, 3), dtype=jnp.float32) * 0.2,
        # batchnorm affine params (deterministic, non-trivial)
        "g1": 1.0 + 0.1 * jax.random.normal(k3, (C,), dtype=jnp.float32),
        "b1": 0.1 * jax.random.normal(k4, (C,), dtype=jnp.float32),
        "g2": 1.0 + 0.1 * jax.random.normal(k5, (C,), dtype=jnp.float32),
        "b2": 0.1 * jax.random.normal(k6, (C,), dtype=jnp.float32),
    }

    out = jax.jit(residual_block_forward)(x, params)
    out = jax.block_until_ready(out)

    ref = _ref_forward(x, params["w1"], params["g1"], params["b1"],
                       params["w2"], params["g2"], params["b2"])
    ref = jax.block_until_ready(ref)

    assert out.shape == (B, C, H, W), out.shape
    max_err = float(jnp.max(jnp.abs(out - ref)))
    assert max_err < 1e-3, f"mismatch vs reference: max_err={max_err}"

    print("KERNEL_OK")
</pallas_src>

<mosaic_0001>
module attributes {stable_mosaic.version = 11 : i64} {
  func.func @_bn_add_relu_kernel(%arg0: i32, %arg1: memref<1x4x288xf32, #tpu.memory_space<vmem>>, %arg2: memref<1x4x326xf32, #tpu.memory_space<vmem>>, %arg3: memref<4x1xf32, #tpu.memory_space<vmem>>, %arg4: memref<4x1xf32, #tpu.memory_space<vmem>>, %arg5: memref<1x4x288xf32, #tpu.memory_space<vmem>>) attributes {dimension_semantics = [#tpu.dimension_semantics<parallel>], iteration_bounds = array<i64: 2>, scalar_prefetch = 0 : i64, scratch_operands = 0 : i64, tpu.core_type = #tpu.core_type<tc>, window_params = [{transform_indices = @transform_0, window_bounds = array<i64: 1, 4, 288>}, {transform_indices = @transform_1, window_bounds = array<i64: 1, 4, 326>}, {pipeline_mode = #tpu.pipeline_mode<synchronous>, transform_indices = @transform_2, window_bounds = array<i64: 4, 1>}, {pipeline_mode = #tpu.pipeline_mode<synchronous>, transform_indices = @transform_3, window_bounds = array<i64: 4, 1>}, {transform_indices = @transform_4, window_bounds = array<i64: 1, 4, 288>}]} {
    %c0 = arith.constant 0 : index
    %c0_0 = arith.constant 0 : index
    %c19 = arith.constant 19 : index
    %0 = vector.load %arg2[%c0, %c0_0, %c19] : memref<1x4x326xf32, #tpu.memory_space<vmem>>, vector<1x4x288xf32>
    %1 = vector.shape_cast %0 : vector<1x4x288xf32> to vector<4x288xf32>
    %c0_1 = arith.constant 0 : index
    %c0_2 = arith.constant 0 : index
    %c0_3 = arith.constant 0 : index
    %2 = vector.load %arg1[%c0_1, %c0_2, %c0_3] : memref<1x4x288xf32, #tpu.memory_space<vmem>>, vector<1x4x288xf32>
    %3 = vector.shape_cast %2 : vector<1x4x288xf32> to vector<4x288xf32>
    %c0_4 = arith.constant 0 : index
    %c0_5 = arith.constant 0 : index
    %4 = vector.load %arg3[%c0_4, %c0_5] : memref<4x1xf32, #tpu.memory_space<vmem>>, vector<4x1xf32>
    %5 = vector.broadcast %4 : vector<4x1xf32> to vector<4x288xf32>
    %6 = arith.mulf %3, %5 : vector<4x288xf32>
    %c0_6 = arith.constant 0 : index
    %c0_7 = arith.constant 0 : index
    %7 = vector.load %arg4[%c0_6, %c0_7] : memref<4x1xf32, #tpu.memory_space<vmem>>, vector<4x1xf32>
    %8 = vector.broadcast %7 : vector<4x1xf32> to vector<4x288xf32>
    %9 = arith.addf %6, %8 : vector<4x288xf32>
    %10 = arith.addf %9, %1 : vector<4x288xf32>
    %cst = arith.constant 0.000000e+00 : f32
    %11 = vector.broadcast %cst : f32 to vector<4x288xf32>
    %12 = arith.maximumf %10, %11 : vector<4x288xf32>
    %c0_8 = arith.constant 0 : index
    %c0_9 = arith.constant 0 : index
    %c0_10 = arith.constant 0 : index
    %13 = vector.load %arg5[%c0_8, %c0_9, %c0_10] : memref<1x4x288xf32, #tpu.memory_space<vmem>>, vector<1x4x288xf32>
    %14 = vector.shape_cast %13 : vector<1x4x288xf32> to vector<4x288xf32>
    %15 = vector.shape_cast %12 : vector<4x288xf32> to vector<1x4x288xf32>
    tpu.vector_store %arg5[%c0_8, %c0_9, %c0_10], %15 {strides = array<i32>} : memref<1x4x288xf32, #tpu.memory_space<vmem>>, vector<1x4x288xf32>,
    return
  }
  func.func @transform_0(%arg0: i32) -> (i32, i32, i32) {
    %c0_i32 = arith.constant 0 : i32
    %c0_i32_0 = arith.constant 0 : i32
    %c0_i32_1 = arith.constant 0 : i32
    return %arg0, %c0_i32, %c0_i32_0 : i32, i32, i32
  }
  func.func @transform_1(%arg0: i32) -> (i32, i32, i32) {
    %c0_i32 = arith.constant 0 : i32
    %c0_i32_0 = arith.constant 0 : i32
    %c0_i32_1 = arith.constant 0 : i32
    return %arg0, %c0_i32, %c0_i32_0 : i32, i32, i32
  }
  func.func @transform_2(%arg0: i32) -> (i32, i32) {
    %c0_i32 = arith.constant 0 : i32
    %c0_i32_0 = arith.constant 0 : i32
    %c0_i32_1 = arith.constant 0 : i32
    return %c0_i32, %c0_i32_0 : i32, i32
  }
  func.func @transform_3(%arg0: i32) -> (i32, i32) {
    %c0_i32 = arith.constant 0 : i32
    %c0_i32_0 = arith.constant 0 : i32
    %c0_i32_1 = arith.constant 0 : i32
    return %c0_i32, %c0_i32_0 : i32, i32
  }
  func.func @transform_4(%arg0: i32) -> (i32, i32, i32) {
    %c0_i32 = arith.constant 0 : i32
    %c0_i32_0 = arith.constant 0 : i32
    %c0_i32_1 = arith.constant 0 : i32
    return %arg0, %c0_i32, %c0_i32_0 : i32, i32, i32
  }
}

module attributes {stable_mosaic.version = 11 : i64} {
  func.func @_conv_stats_kernel(%arg0: i32, %arg1: memref<1x4x326xf32, #tpu.memory_space<vmem>>, %arg2: memref<4x36xf32, #tpu.memory_space<vmem>>, %arg3: memref<1x288xf32, #tpu.memory_space<vmem>>, %arg4: memref<1x4x288xf32, #tpu.memory_space<vmem>>, %arg5: memref<1x4x1xf32, #tpu.memory_space<vmem>>, %arg6: memref<1x4x1xf32, #tpu.memory_space<vmem>>, %arg7: memref<36x288xf32, #tpu.memory_space<vmem>>) attributes {dimension_semantics = [#tpu.dimension_semantics<parallel>], iteration_bounds = array<i64: 2>, scalar_prefetch = 0 : i64, scratch_operands = 1 : i64, tpu.core_type = #tpu.core_type<tc>, window_params = [{transform_indices = @transform_0, window_bounds = array<i64: 1, 4, 326>}, {pipeline_mode = #tpu.pipeline_mode<synchronous>, transform_indices = @transform_1, window_bounds = array<i64: 4, 36>}, {pipeline_mode = #tpu.pipeline_mode<synchronous>, transform_indices = @transform_2, window_bounds = array<i64: 1, 288>}, {transform_indices = @transform_3, window_bounds = array<i64: 1, 4, 288>}, {transform_indices = @transform_4, window_bounds = array<i64: 1, 4, 1>}, {transform_indices = @transform_5, window_bounds = array<i64: 1, 4, 1>}]} {
    %c0 = arith.constant 0 : index
    %c0_0 = arith.constant 0 : index
    %c0_1 = arith.constant 0 : index
    %0 = vector.load %arg1[%c0, %c0_0, %c0_1] : memref<1x4x326xf32, #tpu.memory_space<vmem>>, vector<1x4x288xf32>
    %1 = vector.shape_cast %0 : vector<1x4x288xf32> to vector<4x288xf32>
    %c0_2 = arith.constant 0 : index
    %c0_3 = arith.constant 0 : index
    %2 = vector.load %arg7[%c0_2, %c0_3] : memref<36x288xf32, #tpu.memory_space<vmem>>, vector<4x288xf32>
    tpu.vector_store %arg7[%c0_2, %c0_3], %1 {strides = array<i32>} : memref<36x288xf32, #tpu.memory_space<vmem>>, vector<4x288xf32>,
    %c0_4 = arith.constant 0 : index
    %c0_5 = arith.constant 0 : index
    %c1 = arith.constant 1 : index
    %3 = vector.load %arg1[%c0_4, %c0_5, %c1] : memref<1x4x326xf32, #tpu.memory_space<vmem>>, vector<1x4x288xf32>
    %4 = vector.shape_cast %3 : vector<1x4x288xf32> to vector<4x288xf32>
    %c4 = arith.constant 4 : index
    %c0_6 = arith.constant 0 : index
    %5 = vector.load %arg7[%c4, %c0_6] : memref<36x288xf32, #tpu.memory_space<vmem>>, vector<4x288xf32>
    tpu.vector_store %arg7[%c4, %c0_6], %4 {strides = array<i32>} : memref<36x288xf32, #tpu.memory_space<vmem>>, vector<4x288xf32>,
    %c0_7 = arith.constant 0 : index
    %c0_8 = arith.constant 0 : index
    %c2 = arith.constant 2 : index
    %6 = vector.load %arg1[%c0_7, %c0_8, %c2] : memref<1x4x326xf32, #tpu.memory_space<vmem>>, vector<1x4x288xf32>
    %7 = vector.shape_cast %6 : vector<1x4x288xf32> to vector<4x288xf32>
    %c8 = arith.constant 8 : index
    %c0_9 = arith.constant 0 : index
    %8 = vector.load %arg7[%c8, %c0_9] : memref<36x288xf32, #tpu.memory_space<vmem>>, vector<4x288xf32>
    tpu.vector_store %arg7[%c8, %c0_9], %7 {strides = array<i32>} : memref<36x288xf32, #tpu.memory_space<vmem>>, vector<4x288xf32>,
    %c0_10 = arith.constant 0 : index
    %c0_11 = arith.constant 0 : index
    %c18 = arith.constant 18 : index
    %9 = vector.load %arg1[%c0_10, %c0_11, %c18] : memref<1x4x326xf32, #tpu.memory_space<vmem>>, vector<1x4x288xf32>
    %10 = vector.shape_cast %9 : vector<1x4x288xf32> to vector<4x288xf32>
    %c12 = arith.constant 12 : index
    %c0_12 = arith.constant 0 : index
    %11 = vector.load %arg7[%c12, %c0_12] : memref<36x288xf32, #tpu.memory_space<vmem>>, vector<4x288xf32>
    tpu.vector_store %arg7[%c12, %c0_12], %10 {strides = array<i32>} : memref<36x288xf32, #tpu.memory_space<vmem>>, vector<4x288xf32>,
    %c0_13 = arith.constant 0 : index
    %c0_14 = arith.constant 0 : index
    %c19 = arith.constant 19 : index
    %12 = vector.load %arg1[%c0_13, %c0_14, %c19] : memref<1x4x326xf32, #tpu.memory_space<vmem>>, vector<1x4x288xf32>
    %13 = vector.shape_cast %12 : vector<1x4x288xf32> to vector<4x288xf32>
    %c16 = arith.constant 16 : index
    %c0_15 = arith.constant 0 : index
    %14 = vector.load %arg7[%c16, %c0_15] : memref<36x288xf32, #tpu.memory_space<vmem>>, vector<4x288xf32>
    tpu.vector_store %arg7[%c16, %c0_15], %13 {strides = array<i32>} : memref<36x288xf32, #tpu.memory_space<vmem>>, vector<4x288xf32>,
    %c0_16 = arith.constant 0 : index
    %c0_17 = arith.constant 0 : index
    %c20 = arith.constant 20 : index
    %15 = vector.load %arg1[%c0_16, %c0_17, %c20] : memref<1x4x326xf32, #tpu.memory_space<vmem>>, vector<1x4x288xf32>
    %16 = vector.shape_cast %15 : vector<1x4x288xf32> to vector<4x288xf32>
    %c20_18 = arith.constant 20 : index
    %c0_19 = arith.constant 0 : index
    %17 = vector.load %arg7[%c20_18, %c0_19] : memref<36x288xf32, #tpu.memory_space<vmem>>, vector<4x288xf32>
    tpu.vector_store %arg7[%c20_18, %c0_19], %16 {strides = array<i32>} : memref<36x288xf32, #tpu.memory_space<vmem>>, vector<4x288xf32>,
    %c0_20 = arith.constant 0 : index
    %c0_21 = arith.constant 0 : index
    %c36 = arith.constant 36 : index
    %18 = vector.load %arg1[%c0_20, %c0_21, %c36] : memref<1x4x326xf32, #tpu.memory_space<vmem>>, vector<1x4x288xf32>
    %19 = vector.shape_cast %18 : vector<1x4x288xf32> to vector<4x288xf32>
    %c24 = arith.constant 24 : index
    %c0_22 = arith.constant 0 : index
    %20 = vector.load %arg7[%c24, %c0_22] : memref<36x288xf32, #tpu.memory_space<vmem>>, vector<4x288xf32>
    tpu.vector_store %arg7[%c24, %c0_22], %19 {strides = array<i32>} : memref<36x288xf32, #tpu.memory_space<vmem>>, vector<4x288xf32>,
    %c0_23 = arith.constant 0 : index
    %c0_24 = arith.constant 0 : index
    %c37 = arith.constant 37 : index
    %21 = vector.load %arg1[%c0_23, %c0_24, %c37] : memref<1x4x326xf32, #tpu.memory_space<vmem>>, vector<1x4x288xf32>
    %22 = vector.shape_cast %21 : vector<1x4x288xf32> to vector<4x288xf32>
    %c28 = arith.constant 28 : index
    %c0_25 = arith.constant 0 : index
    %23 = vector.load %arg7[%c28, %c0_25] : memref<36x288xf32, #tpu.memory_space<vmem>>, vector<4x288xf32>
    tpu.vector_store %arg7[%c28, %c0_25], %22 {strides = array<i32>} : memref<36x288xf32, #tpu.memory_space<vmem>>, vector<4x288xf32>,
    %c0_26 = arith.constant 0 : index
    %c0_27 = arith.constant 0 : index
    %c38 = arith.constant 38 : index
    %24 = vector.load %arg1[%c0_26, %c0_27, %c38] : memref<1x4x326xf32, #tpu.memory_space<vmem>>, vector<1x4x288xf32>
    %25 = vector.shape_cast %24 : vector<1x4x288xf32> to vector<4x288xf32>
    %c32 = arith.constant 32 : index
    %c0_28 = arith.constant 0 : index
    %26 = vector.load %arg7[%c32, %c0_28] : memref<36x288xf32, #tpu.memory_space<vmem>>, vector<4x288xf32>
    tpu.vector_store %arg7[%c32, %c0_28], %25 {strides = array<i32>} : memref<36x288xf32, #tpu.memory_space<vmem>>, vector<4x288xf32>,
    %c0_29 = arith.constant 0 : index
    %c0_30 = arith.constant 0 : index
    %27 = vector.load %arg2[%c0_29, %c0_30] : memref<4x36xf32, #tpu.memory_space<vmem>>, vector<4x36xf32>
    %c0_31 = arith.constant 0 : index
    %c0_32 = arith.constant 0 : index
    %28 = vector.load %arg7[%c0_31, %c0_32] : memref<36x288xf32, #tpu.memory_space<vmem>>, vector<36x288xf32>
    %cst = arith.constant dense<0.000000e+00> : vector<4x288xf32>
    %29 = tpu.matmul %27, %28, %cst {dimension_numbers = #tpu.dot_dimension_numbers<[1], [0], [0], [1], [0, 0, 1, 1], [], []>} : vector<4x36xf32>, vector<36x288xf32>, vector<4x288xf32> -> vector<4x288xf32>
    %c0_33 = arith.constant 0 : index
    %c0_34 = arith.constant 0 : index
    %c0_35 = arith.constant 0 : index
    %30 = vector.load %arg4[%c0_33, %c0_34, %c0_35] : memref<1x4x288xf32, #tpu.memory_space<vmem>>, vector<1x4x288xf32>
    %31 = vector.shape_cast %30 : vector<1x4x288xf32> to vector<4x288xf32>
    %32 = vector.shape_cast %29 : vector<4x288xf32> to vector<1x4x288xf32>
    tpu.vector_store %arg4[%c0_33, %c0_34, %c0_35], %32 {strides = array<i32>} : memref<1x4x288xf32, #tpu.memory_space<vmem>>, vector<1x4x288xf32>,
    %c0_36 = arith.constant 0 : index
    %c0_37 = arith.constant 0 : index
    %33 = vector.load %arg3[%c0_36, %c0_37] : memref<1x288xf32, #tpu.memory_space<vmem>>, vector<1x288xf32>
    %34 = vector.broadcast %33 : vector<1x288xf32> to vector<4x288xf32>
    %35 = arith.mulf %29, %34 : vector<4x288xf32>
    %cst_38 = arith.constant dense<0.000000e+00> : vector<4xf32>
    %36 = vector.multi_reduction <add>, %35, %cst_38 [1] : vector<4x288xf32> to vector<4xf32>
    %37 = vector.shape_cast %36 : vector<4xf32> to vector<4x1xf32>
    %c0_39 = arith.constant 0 : index
    %c0_40 = arith.constant 0 : index
    %c0_41 = arith.constant 0 : index
    %38 = vector.load %arg5[%c0_39, %c0_40, %c0_41] : memref<1x4x1xf32, #tpu.memory_space<vmem>>, vector<1x4x1xf32>
    %39 = vector.shape_cast %38 : vector<1x4x1xf32> to vector<4x1xf32>
    %40 = vector.shape_cast %37 : vector<4x1xf32> to vector<1x4x1xf32>
    tpu.vector_store %arg5[%c0_39, %c0_40, %c0_41], %40 {strides = array<i32>} : memref<1x4x1xf32, #tpu.memory_space<vmem>>, vector<1x4x1xf32>,
    %41 = arith.mulf %35, %35 : vector<4x288xf32>
    %cst_42 = arith.constant dense<0.000000e+00> : vector<4xf32>
    %42 = vector.multi_reduction <add>, %41, %cst_42 [1] : vector<4x288xf32> to vector<4xf32>
    %43 = vector.shape_cast %42 : vector<4xf32> to vector<4x1xf32>
    %c0_43 = arith.constant 0 : index
    %c0_44 = arith.constant 0 : index
    %c0_45 = arith.constant 0 : index
    %44 = vector.load %arg6[%c0_43, %c0_44, %c0_45] : memref<1x4x1xf32, #tpu.memory_space<vmem>>, vector<1x4x1xf32>
    %45 = vector.shape_cast %44 : vector<1x4x1xf32> to vector<4x1xf32>
    %46 = vector.shape_cast %43 : vector<4x1xf32> to vector<1x4x1xf32>
    tpu.vector_store %arg6[%c0_43, %c0_44, %c0_45], %46 {strides = array<i32>} : memref<1x4x1xf32, #tpu.memory_space<vmem>>, vector<1x4x1xf32>,
    return
  }
  func.func @transform_0(%arg0: i32) -> (i32, i32, i32) {
    %c0_i32 = arith.constant 0 : i32
    %c0_i32_0 = arith.constant 0 : i32
    %c0_i32_1 = arith.constant 0 : i32
    return %arg0, %c0_i32, %c0_i32_0 : i32, i32, i32
  }
  func.func @transform_1(%arg0: i32) -> (i32, i32) {
    %c0_i32 = arith.constant 0 : i32
    %c0_i32_0 = arith.constant 0 : i32
    %c0_i32_1 = arith.constant 0 : i32
    return %c0_i32, %c0_i32_0 : i32, i32
  }
  func.func @transform_2(%arg0: i32) -> (i32, i32) {
    %c0_i32 = arith.constant 0 : i32
    %c0_i32_0 = arith.constant 0 : i32
    %c0_i32_1 = arith.constant 0 : i32
    return %c0_i32, %c0_i32_0 : i32, i32
  }
  func.func @transform_3(%arg0: i32) -> (i32, i32, i32) {
    %c0_i32 = arith.constant 0 : i32
    %c0_i32_0 = arith.constant 0 : i32
    %c0_i32_1 = arith.constant 0 : i32
    return %arg0, %c0_i32, %c0_i32_0 : i32, i32, i32
  }
  func.func @transform_4(%arg0: i32) -> (i32, i32, i32) {
    %c0_i32 = arith.constant 0 : i32
    %c0_i32_0 = arith.constant 0 : i32
    %c0_i32_1 = arith.constant 0 : i32
    return %arg0, %c0_i32, %c0_i32_0 : i32, i32, i32
  }
  func.func @transform_5(%arg0: i32) -> (i32, i32, i32) {
    %c0_i32 = arith.constant 0 : i32
    %c0_i32_0 = arith.constant 0 : i32
    %c0_i32_1 = arith.constant 0 : i32
    return %arg0, %c0_i32, %c0_i32_0 : i32, i32, i32
  }
}

module attributes {stable_mosaic.version = 11 : i64} {
  func.func @_bn_relu_conv_stats_kernel(%arg0: i32, %arg1: memref<1x4x288xf32, #tpu.memory_space<vmem>>, %arg2: memref<4x36xf32, #tpu.memory_space<vmem>>, %arg3: memref<4x1xf32, #tpu.memory_space<vmem>>, %arg4: memref<4x1xf32, #tpu.memory_space<vmem>>, %arg5: memref<1x288xf32, #tpu.memory_space<vmem>>, %arg6: memref<1x4x288xf32, #tpu.memory_space<vmem>>, %arg7: memref<1x4x1xf32, #tpu.memory_space<vmem>>, %arg8: memref<1x4x1xf32, #tpu.memory_space<vmem>>, %arg9: memref<4x326xf32, #tpu.memory_space<vmem>>, %arg10: memref<36x288xf32, #tpu.memory_space<vmem>>) attributes {dimension_semantics = [#tpu.dimension_semantics<parallel>], iteration_bounds = array<i64: 2>, scalar_prefetch = 0 : i64, scratch_operands = 2 : i64, tpu.core_type = #tpu.core_type<tc>, window_params = [{transform_indices = @transform_0, window_bounds = array<i64: 1, 4, 288>}, {pipeline_mode = #tpu.pipeline_mode<synchronous>, transform_indices = @transform_1, window_bounds = array<i64: 4, 36>}, {pipeline_mode = #tpu.pipeline_mode<synchronous>, transform_indices = @transform_2, window_bounds = array<i64: 4, 1>}, {pipeline_mode = #tpu.pipeline_mode<synchronous>, transform_indices = @transform_3, window_bounds = array<i64: 4, 1>}, {pipeline_mode = #tpu.pipeline_mode<synchronous>, transform_indices = @transform_4, window_bounds = array<i64: 1, 288>}, {transform_indices = @transform_5, window_bounds = array<i64: 1, 4, 288>}, {transform_indices = @transform_6, window_bounds = array<i64: 1, 4, 1>}, {transform_indices = @transform_7, window_bounds = array<i64: 1, 4, 1>}]} {
    %c0 = arith.constant 0 : index
    %c0_0 = arith.constant 0 : index
    %c0_1 = arith.constant 0 : index
    %0 = vector.load %arg1[%c0, %c0_0, %c0_1] : memref<1x4x288xf32, #tpu.memory_space<vmem>>, vector<1x4x288xf32>
    %1 = vector.shape_cast %0 : vector<1x4x288xf32> to vector<4x288xf32>
    %c0_2 = arith.constant 0 : index
    %c0_3 = arith.constant 0 : index
    %2 = vector.load %arg3[%c0_2, %c0_3] : memref<4x1xf32, #tpu.memory_space<vmem>>, vector<4x1xf32>
    %3 = vector.broadcast %2 : vector<4x1xf32> to vector<4x288xf32>
    %4 = arith.mulf %1, %3 : vector<4x288xf32>
    %c0_4 = arith.constant 0 : index
    %c0_5 = arith.constant 0 : index
    %5 = vector.load %arg4[%c0_4, %c0_5] : memref<4x1xf32, #tpu.memory_space<vmem>>, vector<4x1xf32>
    %6 = vector.broadcast %5 : vector<4x1xf32> to vector<4x288xf32>
    %7 = arith.addf %4, %6 : vector<4x288xf32>
    %cst = arith.constant 0.000000e+00 : f32
    %8 = vector.broadcast %cst : f32 to vector<4x288xf32>
    %9 = arith.maximumf %7, %8 : vector<4x288xf32>
    %c0_6 = arith.constant 0 : index
    %c0_7 = arith.constant 0 : index
    %10 = vector.load %arg5[%c0_6, %c0_7] : memref<1x288xf32, #tpu.memory_space<vmem>>, vector<1x288xf32>
    %11 = vector.broadcast %10 : vector<1x288xf32> to vector<4x288xf32>
    %12 = arith.mulf %9, %11 : vector<4x288xf32>
    %cst_8 = arith.constant 0.000000e+00 : f32
    %13 = vector.broadcast %cst_8 : f32 to vector<4x326xf32>
    %c0_9 = arith.constant 0 : index
    %c0_10 = arith.constant 0 : index
    %14 = vector.load %arg9[%c0_9, %c0_10] : memref<4x326xf32, #tpu.memory_space<vmem>>, vector<4x326xf32>
    tpu.vector_store %arg9[%c0_9, %c0_10], %13 {strides = array<i32>} : memref<4x326xf32, #tpu.memory_space<vmem>>, vector<4x326xf32>,
    %c0_11 = arith.constant 0 : index
    %c19 = arith.constant 19 : index
    %15 = vector.load %arg9[%c0_11, %c19] : memref<4x326xf32, #tpu.memory_space<vmem>>, vector<4x288xf32>
    tpu.vector_store %arg9[%c0_11, %c19], %12 {strides = array<i32>} : memref<4x326xf32, #tpu.memory_space<vmem>>, vector<4x288xf32>,
    %c0_12 = arith.constant 0 : index
    %c0_13 = arith.constant 0 : index
    %16 = vector.load %arg9[%c0_12, %c0_13] : memref<4x326xf32, #tpu.memory_space<vmem>>, vector<4x288xf32>
    %c0_14 = arith.constant 0 : index
    %c0_15 = arith.constant 0 : index
    %17 = vector.load %arg10[%c0_14, %c0_15] : memref<36x288xf32, #tpu.memory_space<vmem>>, vector<4x288xf32>
    tpu.vector_store %arg10[%c0_14, %c0_15], %16 {strides = array<i32>} : memref<36x288xf32, #tpu.memory_space<vmem>>, vector<4x288xf32>,
    %c0_16 = arith.constant 0 : index
    %c1 = arith.constant 1 : index
    %18 = vector.load %arg9[%c0_16, %c1] : memref<4x326xf32, #tpu.memory_space<vmem>>, vector<4x288xf32>
    %c4 = arith.constant 4 : index
    %c0_17 = arith.constant 0 : index
    %19 = vector.load %arg10[%c4, %c0_17] : memref<36x288xf32, #tpu.memory_space<vmem>>, vector<4x288xf32>
    tpu.vector_store %arg10[%c4, %c0_17], %18 {strides = array<i32>} : memref<36x288xf32, #tpu.memory_space<vmem>>, vector<4x288xf32>,
    %c0_18 = arith.constant 0 : index
    %c2 = arith.constant 2 : index
    %20 = vector.load %arg9[%c0_18, %c2] : memref<4x326xf32, #tpu.memory_space<vmem>>, vector<4x288xf32>
    %c8 = arith.constant 8 : index
    %c0_19 = arith.constant 0 : index
    %21 = vector.load %arg10[%c8, %c0_19] : memref<36x288xf32, #tpu.memory_space<vmem>>, vector<4x288xf32>
    tpu.vector_store %arg10[%c8, %c0_19], %20 {strides = array<i32>} : memref<36x288xf32, #tpu.memory_space<vmem>>, vector<4x288xf32>,
    %c0_20 = arith.constant 0 : index
    %c18 = arith.constant 18 : index
    %22 = vector.load %arg9[%c0_20, %c18] : memref<4x326xf32, #tpu.memory_space<vmem>>, vector<4x288xf32>
    %c12 = arith.constant 12 : index
    %c0_21 = arith.constant 0 : index
    %23 = vector.load %arg10[%c12, %c0_21] : memref<36x288xf32, #tpu.memory_space<vmem>>, vector<4x288xf32>
    tpu.vector_store %arg10[%c12, %c0_21], %22 {strides = array<i32>} : memref<36x288xf32, #tpu.memory_space<vmem>>, vector<4x288xf32>,
    %c0_22 = arith.constant 0 : index
    %c19_23 = arith.constant 19 : index
    %24 = vector.load %arg9[%c0_22, %c19_23] : memref<4x326xf32, #tpu.memory_space<vmem>>, vector<4x288xf32>
    %c16 = arith.constant 16 : index
    %c0_24 = arith.constant 0 : index
    %25 = vector.load %arg10[%c16, %c0_24] : memref<36x288xf32, #tpu.memory_space<vmem>>, vector<4x288xf32>
    tpu.vector_store %arg10[%c16, %c0_24], %24 {strides = array<i32>} : memref<36x288xf32, #tpu.memory_space<vmem>>, vector<4x288xf32>,
    %c0_25 = arith.constant 0 : index
    %c20 = arith.constant 20 : index
    %26 = vector.load %arg9[%c0_25, %c20] : memref<4x326xf32, #tpu.memory_space<vmem>>, vector<4x288xf32>
    %c20_26 = arith.constant 20 : index
    %c0_27 = arith.constant 0 : index
    %27 = vector.load %arg10[%c20_26, %c0_27] : memref<36x288xf32, #tpu.memory_space<vmem>>, vector<4x288xf32>
    tpu.vector_store %arg10[%c20_26, %c0_27], %26 {strides = array<i32>} : memref<36x288xf32, #tpu.memory_space<vmem>>, vector<4x288xf32>,
    %c0_28 = arith.constant 0 : index
    %c36 = arith.constant 36 : index
    %28 = vector.load %arg9[%c0_28, %c36] : memref<4x326xf32, #tpu.memory_space<vmem>>, vector<4x288xf32>
    %c24 = arith.constant 24 : index
    %c0_29 = arith.constant 0 : index
    %29 = vector.load %arg10[%c24, %c0_29] : memref<36x288xf32, #tpu.memory_space<vmem>>, vector<4x288xf32>
    tpu.vector_store %arg10[%c24, %c0_29], %28 {strides = array<i32>} : memref<36x288xf32, #tpu.memory_space<vmem>>, vector<4x288xf32>,
    %c0_30 = arith.constant 0 : index
    %c37 = arith.constant 37 : index
    %30 = vector.load %arg9[%c0_30, %c37] : memref<4x326xf32, #tpu.memory_space<vmem>>, vector<4x288xf32>
    %c28 = arith.constant 28 : index
    %c0_31 = arith.constant 0 : index
    %31 = vector.load %arg10[%c28, %c0_31] : memref<36x288xf32, #tpu.memory_space<vmem>>, vector<4x288xf32>
    tpu.vector_store %arg10[%c28, %c0_31], %30 {strides = array<i32>} : memref<36x288xf32, #tpu.memory_space<vmem>>, vector<4x288xf32>,
    %c0_32 = arith.constant 0 : index
    %c38 = arith.constant 38 : index
    %32 = vector.load %arg9[%c0_32, %c38] : memref<4x326xf32, #tpu.memory_space<vmem>>, vector<4x288xf32>
    %c32 = arith.constant 32 : index
    %c0_33 = arith.constant 0 : index
    %33 = vector.load %arg10[%c32, %c0_33] : memref<36x288xf32, #tpu.memory_space<vmem>>, vector<4x288xf32>
    tpu.vector_store %arg10[%c32, %c0_33], %32 {strides = array<i32>} : memref<36x288xf32, #tpu.memory_space<vmem>>, vector<4x288xf32>,
    %c0_34 = arith.constant 0 : index
    %c0_35 = arith.constant 0 : index
    %34 = vector.load %arg2[%c0_34, %c0_35] : memref<4x36xf32, #tpu.memory_space<vmem>>, vector<4x36xf32>
    %c0_36 = arith.constant 0 : index
    %c0_37 = arith.constant 0 : index
    %35 = vector.load %arg10[%c0_36, %c0_37] : memref<36x288xf32, #tpu.memory_space<vmem>>, vector<36x288xf32>
    %cst_38 = arith.constant dense<0.000000e+00> : vector<4x288xf32>
    %36 = tpu.matmul %34, %35, %cst_38 {dimension_numbers = #tpu.dot_dimension_numbers<[1], [0], [0], [1], [0, 0, 1, 1], [], []>} : vector<4x36xf32>, vector<36x288xf32>, vector<4x288xf32> -> vector<4x288xf32>
    %c0_39 = arith.constant 0 : index
    %c0_40 = arith.constant 0 : index
    %c0_41 = arith.constant 0 : index
    %37 = vector.load %arg6[%c0_39, %c0_40, %c0_41] : memref<1x4x288xf32, #tpu.memory_space<vmem>>, vector<1x4x288xf32>
    %38 = vector.shape_cast %37 : vector<1x4x288xf32> to vector<4x288xf32>
    %39 = vector.shape_cast %36 : vector<4x288xf32> to vector<1x4x288xf32>
    tpu.vector_store %arg6[%c0_39, %c0_40, %c0_41], %39 {strides = array<i32>} : memref<1x4x288xf32, #tpu.memory_space<vmem>>, vector<1x4x288xf32>,
    %c0_42 = arith.constant 0 : index
    %c0_43 = arith.constant 0 : index
    %40 = vector.load %arg5[%c0_42, %c0_43] : memref<1x288xf32, #tpu.memory_space<vmem>>, vector<1x288xf32>
    %41 = vector.broadcast %40 : vector<1x288xf32> to vector<4x288xf32>
    %42 = arith.mulf %36, %41 : vector<4x288xf32>
    %cst_44 = arith.constant dense<0.000000e+00> : vector<4xf32>
    %43 = vector.multi_reduction <add>, %42, %cst_44 [1] : vector<4x288xf32> to vector<4xf32>
    %44 = vector.shape_cast %43 : vector<4xf32> to vector<4x1xf32>
    %c0_45 = arith.constant 0 : index
    %c0_46 = arith.constant 0 : index
    %c0_47 = arith.constant 0 : index
    %45 = vector.load %arg7[%c0_45, %c0_46, %c0_47] : memref<1x4x1xf32, #tpu.memory_space<vmem>>, vector<1x4x1xf32>
    %46 = vector.shape_cast %45 : vector<1x4x1xf32> to vector<4x1xf32>
    %47 = vector.shape_cast %44 : vector<4x1xf32> to vector<1x4x1xf32>
    tpu.vector_store %arg7[%c0_45, %c0_46, %c0_47], %47 {strides = array<i32>} : memref<1x4x1xf32, #tpu.memory_space<vmem>>, vector<1x4x1xf32>,
    %48 = arith.mulf %42, %42 : vector<4x288xf32>
    %cst_48 = arith.constant dense<0.000000e+00> : vector<4xf32>
    %49 = vector.multi_reduction <add>, %48, %cst_48 [1] : vector<4x288xf32> to vector<4xf32>
    %50 = vector.shape_cast %49 : vector<4xf32> to vector<4x1xf32>
    %c0_49 = arith.constant 0 : index
    %c0_50 = arith.constant 0 : index
    %c0_51 = arith.constant 0 : index
    %51 = vector.load %arg8[%c0_49, %c0_50, %c0_51] : memref<1x4x1xf32, #tpu.memory_space<vmem>>, vector<1x4x1xf32>
    %52 = vector.shape_cast %51 : vector<1x4x1xf32> to vector<4x1xf32>
    %53 = vector.shape_cast %50 : vector<4x1xf32> to vector<1x4x1xf32>
    tpu.vector_store %arg8[%c0_49, %c0_50, %c0_51], %53 {strides = array<i32>} : memref<1x4x1xf32, #tpu.memory_space<vmem>>, vector<1x4x1xf32>,
    return
  }
  func.func @transform_0(%arg0: i32) -> (i32, i32, i32) {
    %c0_i32 = arith.constant 0 : i32
    %c0_i32_0 = arith.constant 0 : i32
    %c0_i32_1 = arith.constant 0 : i32
    return %arg0, %c0_i32, %c0_i32_0 : i32, i32, i32
  }
  func.func @transform_1(%arg0: i32) -> (i32, i32) {
    %c0_i32 = arith.constant 0 : i32
    %c0_i32_0 = arith.constant 0 : i32
    %c0_i32_1 = arith.constant 0 : i32
    return %c0_i32, %c0_i32_0 : i32, i32
  }
  func.func @transform_2(%arg0: i32) -> (i32, i32) {
    %c0_i32 = arith.constant 0 : i32
    %c0_i32_0 = arith.constant 0 : i32
    %c0_i32_1 = arith.constant 0 : i32
    return %c0_i32, %c0_i32_0 : i32, i32
  }
  func.func @transform_3(%arg0: i32) -> (i32, i32) {
    %c0_i32 = arith.constant 0 : i32
    %c0_i32_0 = arith.constant 0 : i32
    %c0_i32_1 = arith.constant 0 : i32
    return %c0_i32, %c0_i32_0 : i32, i32
  }
  func.func @transform_4(%arg0: i32) -> (i32, i32) {
    %c0_i32 = arith.constant 0 : i32
    %c0_i32_0 = arith.constant 0 : i32
    %c0_i32_1 = arith.constant 0 : i32
    return %c0_i32, %c0_i32_0 : i32, i32
  }
  func.func @transform_5(%arg0: i32) -> (i32, i32, i32) {
    %c0_i32 = arith.constant 0 : i32
    %c0_i32_0 = arith.constant 0 : i32
    %c0_i32_1 = arith.constant 0 : i32
    return %arg0, %c0_i32, %c0_i32_0 : i32, i32, i32
  }
  func.func @transform_6(%arg0: i32) -> (i32, i32, i32) {
    %c0_i32 = arith.constant 0 : i32
    %c0_i32_0 = arith.constant 0 : i32
    %c0_i32_1 = arith.constant 0 : i32
    return %arg0, %c0_i32, %c0_i32_0 : i32, i32, i32
  }
  func.func @transform_7(%arg0: i32) -> (i32, i32, i32) {
    %c0_i32 = arith.constant 0 : i32
    %c0_i32_0 = arith.constant 0 : i32
    %c0_i32_1 = arith.constant 0 : i32
    return %arg0, %c0_i32, %c0_i32_0 : i32, i32, i32
  }
}

</mosaic_0001>

<bundles_post_ra>
// kernel: residual_block_forward.5
= control target key start
LH: loop header
LB: loop body
LE: loop exit
PB: predicated region body
PF: predicated region fallthrough
CT: control target
= control target key end

     0   :  { %s399_s15 = smov 0   ;;  %s430_s0 = inlined_call_operand.vmem [shape: f32[2,4,288], index: 0, kind: input, shape index: {}]   ;;  %s431_s1 = inlined_call_operand.vmem [shape: f32[2,4,326], index: 1, kind: input, shape index: {}]   ;;  %s432_s2 = inlined_call_operand.vmem [shape: f32[4,1], index: 2, kind: input, shape index: {}]   ;;  %s433_s3 = inlined_call_operand.vmem [shape: f32[4,1], index: 3, kind: input, shape index: {}]   ;;  %s434_s4 = inlined_call_operand.vmem [shape: f32[2,4,288], index: 4, kind: output, shape index: {}]  }
   0x1 LB: > { %s340_s16 = sadd.s32 4294967295, %s369_s15   ;;  %p344_p0 = scmp.ge.s32.totalorder %s369_s15, 1  ;;  %s369_s15 = sphi %s399_s15, %s14_s15  }
   0x2   : > { %p172_p1 = scmp.lt.s32.totalorder %s369_s15, 3 }
   0x4   : > { %p173_p2 = pnand %p344_p0, %p172_p1 }
   0x5   : > { %p203_p3 = scmp.lt.s32.totalorder (!%p173_p2), %s340_s16, 1  ;;  %s372_s25 = smov (!%p173_p2), 109  }
   0x6   : > { %176 = sbr.rel (%p173_p2) target bundleno = 150 (0x96), region = 36 }
   0xb   : > { %v222_v0 = vld [vmem:[%s432_s2] sm:$0xf]  ;;  %v371_v1 = vmov 0   ;;  %s436_s16 = smov (!%p203_p3, %s340_s16), 1  ;;  %v373_v5 = vmov 839922192   ;;  %v230_v7 = vlaneseq }
   0xc   : > { %362 = vset.pattern.permute.xlu0 %v371_v1  ;;  %v237_v2 = vld [vmem:[%s433_s3] sm:$0xf]  ;;  %s413_s21 = smul.u32 12, %s436_s16  ;;  %v228_v6 = vunpack.c.l.s4 %v373_v5  ;;  %vm260_vm0 = vcmask 1043456   ;;  %vm262_vm1 = vcmask 891904   ;;  %vm271_vm2 = vcmask 257024  }
   0xd   : > { %225 = vperm.xlu0 %362, %v222_v0   ;;  %v231_v9 = vshrl.u32 %v230_v7, 7 }
   0xe   : > { %s212_s24 = scalar_lea.vmem %s431_s1, %s413_s21  ;;  %v229_v8 = vunpack.c.0.s8 %v228_v6  ;;  %s207_s28 = scalar_lea.vmem %s430_s0, %s413_s21 }
   0xf   : > { %v218_v3 = vld [vmem:[%s212_s24] sm:$0xff]  ;;  %v219_v4 = vld [vmem:[%s212_s24 + $0x8] sm:$0xf]  ;;  %s217_s5 = scalar_lea.vmem %s434_s4, %s413_s21 }
  0x10   : > { %254 = vrot.lane.b32.xlu1 %v218_v3, %s372_s25  ;;  %v232_v11 = vsub.s32 %v229_v8, %v231_v9  ;;  %v220_v16 = vld [vmem:[%s207_s28] sm:$0xff]  ;;  %v221_v17 = vld [vmem:[%s207_s28 + $0x8] sm:$0xf] }
  0x11   : > { %240 = vperm.xlu0 %362, %v237_v2  }
  0x14   : > { %256 = vrot.lane.b32.xlu1 %v219_v4, %s372_s25 }
  0x82   : > { %v255_v10 = vpop.permute.xlu1 %254 }
  0x83   : > { %v258_v13 = vrot.slane %v255_v10, 4 }
  0x86   : > { %v257_v15 = vpop.permute.xlu1 %256 }
  0x87   : > { %v259_v18 = vrot.slane %v257_v15, 4 }
  0x88   : > { %v226_v12 = vpop.permute.xlu0 %225 }
  0x89   : > { %v233_v14 = vrot.slane %v226_v12, %v232_v11  ;;  %v261_v22 = vsel %vm260_vm0, %v258_v13, %v259_v18 }
  0x8a   : > { %v263_v26 = vsel %vm262_vm1, %v255_v10, %v261_v22 }
  0x8b   : > { %v235_v20 = vmul.f32 %v233_v14, %v220_v16  ;;  %v236_v21 = vmul.f32 %v233_v14, %v221_v17 }
  0x8c   : > { %v241_v19 = vpop.permute.xlu0 %240 }
  0x8d   : > { %v248_v23 = vrot.slane %v241_v19, %v232_v11 }
  0x8f   : > { %v250_v24 = vadd.f32 %v248_v23, %v235_v20  ;;  %v251_v25 = vadd.f32 %v248_v23, %v236_v21 }
  0x91   : > { %v266_v27 = vadd.f32 %v263_v26, %v250_v24  ;;  %v267_v28 = vadd.f32 %v257_v15, %v251_v25 }
  0x93   : > { %v268_v29 = vmax.f32 %v266_v27, 0.0  ;;  %v269_v30 = vmax.f32 %v267_v28, 0.0 }
  0x95   : > { %270 = vst [vmem:[%s217_s5] sm:$0xff] %v268_v29  ;;  %272 = vst.msk [vmem:[%s217_s5 + $0x8] sm:$0xf] %vm271_vm2, %v269_v30 }
  0x96 PF: > { %s14_s15 = sadd.s32 1, %s369_s15  }
  0x97   : > { %p11_p4 = scmp.ge.s32.totalorder %s14_s15, 4  }
  0x99   :  { %13 = sbr.rel (!%p11_p4) target bundleno = 1 (0x1), region = 69 }

// kernel: residual_block_forward.3
= control target key start
LH: loop header
LB: loop body
LE: loop exit
PB: predicated region body
PF: predicated region fallthrough
CT: control target
= control target key end

     0   :  { %s862_s18 = smov 0   ;;  %s943_s0 = inlined_call_operand.vmem [shape: f32[2,4,326], index: 0, kind: input, shape index: {}]   ;;  %s944_s1 = inlined_call_operand.vmem [shape: f32[4,36], index: 1, kind: input, shape index: {}]   ;;  %s945_s2 = inlined_call_operand.vmem [shape: f32[1,288], index: 2, kind: input, shape index: {}]   ;;  %s946_s3 = inlined_call_operand.vmem [shape: f32[2,4,288], index: 3, kind: output, shape index: {0}]   ;;  %s947_s4 = inlined_call_operand.vmem [shape: f32[2,4,1], index: 4, kind: output, shape index: {1}]   ;;  %s948_s5 = inlined_call_operand.vmem [shape: f32[2,4,1], index: 5, kind: output, shape index: {2}]  }
   0x1 LB: > { %s754_s19 = sadd.s32 4294967295, %s820_s18   ;;  %p758_p0 = scmp.ge.s32.totalorder %s820_s18, 1  ;;  %s820_s18 = sphi %s862_s18, %s16_s18  }
   0x2   : > { %p192_p1 = scmp.lt.s32.totalorder %s820_s18, 3 }
   0x4   : > { %p193_p2 = pnand %p758_p0, %p192_p1 }
   0x5   : > { %p228_p3 = scmp.lt.s32.totalorder (!%p193_p2), %s754_s19, 1  ;;  %s823_s24 = smov (!%p193_p2), 90  }
   0x6   : > { %196 = sbr.rel (%p193_p2) target bundleno = 529 (0x211), region = 32  ;;  %s824_s25 = smov (!%p193_p2), 91  }
   0x7   : > { %s825_s26 = smov (!%p193_p2), 92   ;;  %s826_s27 = smov (!%p193_p2), 109  }
   0x8   : > { %s827_s28 = smov (!%p193_p2), 108   ;;  %s828_s29 = smov (!%p193_p2), 126  }
   0x9   : > { %s829_s30 = smov (!%p193_p2), 110   ;;  %s830_s6 = smov (!%p193_p2), 127  }
   0xb   : > { %v822_v0 = vmov 0.0   ;;  %s950_s19 = smov (!%p228_p3, %s754_s19), 1  ;;  %vm253_vm0 = vcmask 257024   ;;  %vm831_vm1 = vmmov 0   ;;  %vm411_vm2 = vcmask 736256  }
   0xc   : > { %776 = vmatprep.subr.mxu1 %v822_v0  ;;  %514 = vmatprep.mubr.f32.mxu0 %v822_v0  ;;  %s789_s20 = smul.u32 12, %s950_s19  ;;  %vm370_vm3 = vcmask 752640   ;;  %vm440_vm4 = vcmask 1043456   ;;  %vm275_vm5 = vcmask 261124   ;;  %vm391_vm6 = vcmask 744448   ;;  %s761_s14 = sshll.u32 %s950_s19, 2 }
   0xd   : > { %786 = vmatprep.mubr.msk.f32.mxu1 %vm831_vm1, %v822_v0  ;;  %vm329_vm7 = vcmask 891904   ;;  %vm350_vm8 = vcmask 883712   ;;  %vm288_vm9 = vcmask 1031168   ;;  %vm309_vm10 = vcmask 900096   ;;  %s241_s17 = scalar_lea.vmem %s947_s4, %s761_s14  ;;  %s245_s22 = scalar_lea.vmem %s948_s5, %s761_s14 }
   0xe   : > { %s880_s23 = scalar_lea.vmem %s943_s0, %s789_s20  ;;  %vm267_vm11 = vcmask 1039360   ;;  %vm436_vm12 = vcmask 293888   ;;  %s237_s13 = scalar_lea.vmem %s946_s3, %s789_s20  ;;  %vm624_vm13 = vcmask 3072  }
   0xf   : > { %v401_v1 = vld [vmem:[%s880_s23 + $0x8] sm:$0xf]  ;;  %v400_v2 = vld [vmem:[%s880_s23] sm:$0xff] }
  0x10   : > { %409 = vrot.lane.b32.xlu0 %v401_v1, %s823_s24  ;;  %405 = vrot.lane.b32.xlu1 %v400_v2, %s823_s24  ;;  %v404_v3 = vcombine.high %v400_v2, %v400_v2  ;;  %251 = vst [vmem:[#allocation2] sm:$0xf] %v400_v2  ;;  %v360_v4 = vld [vmem:[%s880_s23 + $0x8] sm:$0xf]  ;;  %v383_v6 = vcombine.low %v400_v2, %v400_v2 }
  0x11   : > { %v810_v5 = vld [vmem:[%s880_s23 + $0x8] ss:$0 sps:$4 sm:$0xff]  }
  0x12   : > { %252 = vst [vmem:[#allocation2 + $0x8] sm:$0xf] %v404_v3  ;;  %v319_v7 = vld [vmem:[%s880_s23 + $0x8] sm:$0xf] }
  0x13   : > { %v811_v8 = vld [vmem:[%s880_s23 + $0x8] ss:$0 sps:$4 sm:$0xff]  }
  0x14   : > { %387 = vrot.lane.b32.xlu1 %v400_v2, %s824_s25  ;;  %368 = vrot.lane.b32.xlu0 %v360_v4, %s825_s26  ;;  %v278_v9 = vld [vmem:[%s880_s23 + $0x8] sm:$0xf] }
  0x15   : > { %v247_v10 = vld [vmem:[%s880_s23 + $0x8] sm:$0xf] }
  0x16   : > { %254 = vst.msk [vmem:[#allocation2 + $0x10] sm:$0xf] %vm253_vm0, %v247_v10  ;;  %v812_v11 = vld [vmem:[%s880_s23 + $0x8] ss:$0 sps:$4 sm:$0xff]  }
  0x17   : > { %v813_v12 = vld [vmem:[%s880_s23 + $0x8] ss:$0 sps:$4 sm:$0xff]  }
  0x18   : > { %407 = vrot.lane.b32.xlu0 %v404_v3, %s823_s24  ;;  %366 = vrot.lane.b32.xlu1 %v404_v3, %s825_s26 }
  0x1c   : > { %389 = vrot.lane.b32.xlu0 %v810_v5, %s824_s25  ;;  %364 = vrot.lane.b32.xlu1 %v400_v2, %s825_s26  ;;  %v420_v5 = vld [vmem:[%s944_s1] sm:$0xf] }
  0x20   : > { %385 = vrot.lane.b32.xlu0 %v383_v6, %s824_s25  ;;  %325 = vrot.lane.b32.xlu1 %v404_v3, %s826_s27 }
  0x24   : > { %327 = vrot.lane.b32.xlu0 %v319_v7, %s826_s27  ;;  %346 = vrot.lane.b32.xlu1 %v400_v2, %s827_s28 }
  0x28   : > { %348 = vrot.lane.b32.xlu0 %v811_v8, %s827_s28  ;;  %323 = vrot.lane.b32.xlu1 %v400_v2, %s826_s27 }
  0x2c   : > { %344 = vrot.lane.b32.xlu0 %v383_v6, %s827_s28  ;;  %284 = vrot.lane.b32.xlu1 %v404_v3, %s828_s29 }
  0x30   : > { %286 = vrot.lane.b32.xlu0 %v278_v9, %s828_s29  ;;  %305 = vrot.lane.b32.xlu1 %v400_v2, %s829_s30  ;;  %v597_v9 = vld [vmem:[%s945_s2] sm:$0x7] }
  0x34   : > { %307 = vrot.lane.b32.xlu0 %v812_v11, %s829_s30  ;;  %282 = vrot.lane.b32.xlu1 %v400_v2, %s828_s29 }
  0x38   : > { %303 = vrot.lane.b32.xlu0 %v383_v6, %s829_s30  ;;  %263 = vrot.lane.b32.xlu1 %v400_v2, %s830_s6 }
  0x3c   : > { %265 = vrot.lane.b32.xlu0 %v813_v12, %s830_s6  ;;  %261 = vrot.lane.b32.xlu1 %v383_v6, %s830_s6  ;;  %v599_v6 = vlaneseq }
  0x3e   : > { %v600_v7 = vshrl.u32 %v599_v6, 7 }
  0x40   : > { %v609_v8 = vsub.s32 2, %v600_v7  ;;  %v605_v10 = vsub.s32 1, %v600_v7 }
  0x42   : > { %v610_v11 = vrot.slane %v597_v9, %v609_v8 }
  0x82   : > { %v410_v13 = vpop.permute.xlu0 %409  ;;  %v406_v14 = vpop.permute.xlu1 %405 }
  0x83   : > { %419 = vst.msk [vmem:[#allocation2 + $0x70] sm:$0xf] %vm253_vm0, %v410_v13 }
  0x86   : > { %v388_v15 = vpop.permute.xlu1 %387  ;;  %v369_v16 = vpop.permute.xlu0 %368 }
  0x87   : > { %378 = vst.msk [vmem:[#allocation2 + $0x58] sm:$0xf] %vm253_vm0, %v369_v16 }
  0x8a   : > { %v408_v17 = vpop.permute.xlu0 %407  ;;  %v367_v18 = vpop.permute.xlu1 %366  ;;  %v435_v19 = vld [vmem:[#allocation2 + $0x70] sm:$0xf] }
  0x8b   : > { %v412_v20 = vsel %vm411_vm2, %v406_v14, %v408_v17  ;;  %v413_v21 = vsel %vm411_vm2, %v408_v17, %v410_v13  ;;  %v372_v22 = vsel %vm370_vm3, %v367_v18, %v369_v16  ;;  %777 = vmatpush3.msk.msra.mxu1 %vm440_vm4, %v435_v19  ;;  %v606_v14 = vrot.slane %v597_v9, %v605_v10 }
  0x8c   : > { %417 = vst [vmem:[#allocation2 + $0x60] sm:$0xf] %v412_v20  ;;  %418 = vst [vmem:[#allocation2 + $0x68] sm:$0xf] %v413_v21  ;;  %778 = vmatprep.subr.mxu1 %v822_v0 }
  0x8d   : > { %377 = vst [vmem:[#allocation2 + $0x50] sm:$0xf] %v372_v22 }
  0x8e   : > { %v390_v23 = vpop.permute.xlu0 %389  ;;  %v365_v24 = vpop.permute.xlu1 %364 }
  0x8f   : > { %v393_v25 = vsel %vm391_vm6, %v388_v15, %v390_v23  ;;  %399 = vst.msk [vmem:[#allocation2 + $0x58] sm:$0xf0] %vm275_vm5, %v390_v23  ;;  %v371_v26 = vsel %vm370_vm3, %v365_v24, %v367_v18 }
  0x90   : > { %398 = vst [vmem:[#allocation2 + $0x50] sm:$0xf0] %v393_v25  ;;  %376 = vst [vmem:[#allocation2 + $0x48] sm:$0xf] %v371_v26 }
  0x92   : > { %v386_v27 = vpop.permute.xlu0 %385  ;;  %v326_v28 = vpop.permute.xlu1 %325 }
  0x93   : > { %v392_v29 = vsel %vm391_vm6, %v386_v27, %v388_v15  ;;  %v434_v30 = vld [vmem:[#allocation2 + $0x68] sm:$0xf]  ;;  %v433_v31 = vld [vmem:[#allocation2 + $0x60] sm:$0xf] }
  0x94   : > { %397 = vst [vmem:[#allocation2 + $0x48] sm:$0xf0] %v392_v29  ;;  %763 = vmatprep.subr.msk.mxu0 %vm440_vm4, %v434_v30 }
  0x95   : > { %764 = vmatpush1.msk.msra.mxu0 %vm440_vm4, %v433_v31 }
  0x96   : > { %v328_v32 = vpop.permute.xlu0 %327  ;;  %v347_v33 = vpop.permute.xlu1 %346  ;;  %v432_v34 = vld [vmem:[#allocation2 + $0x58] sm:$0xff] }
  0x97   : > { %v331_v35 = vsel %vm329_vm7, %v326_v28, %v328_v32  ;;  %337 = vst.msk [vmem:[#allocation2 + $0x40] sm:$0xf] %vm253_vm0, %v328_v32  ;;  %779 = vmatpush3.msra.mxu1 %v432_v34  ;;  %v431_v36 = vld [vmem:[#allocation2 + $0x50] sm:$0xff] }
  0x98   : > { %336 = vst [vmem:[#allocation2 + $0x38] sm:$0xf] %v331_v35  ;;  %474 = vmatprep.subr.mxu0 %v431_v36  ;;  %780 = vmatprep.subr.mxu1 %v822_v0 }
  0x9a   : > { %v349_v37 = vpop.permute.xlu0 %348  ;;  %v324_v38 = vpop.permute.xlu1 %323 }
  0x9b   : > { %v352_v39 = vsel %vm350_vm8, %v347_v33, %v349_v37  ;;  %358 = vst.msk [vmem:[#allocation2 + $0x40] sm:$0xf0] %vm275_vm5, %v349_v37  ;;  %v330_v40 = vsel %vm329_vm7, %v324_v38, %v326_v28  ;;  %v430_v41 = vld [vmem:[#allocation2 + $0x48] sm:$0xff] }
  0x9c   : > { %357 = vst [vmem:[#allocation2 + $0x38] sm:$0xf0] %v352_v39  ;;  %335 = vst [vmem:[#allocation2 + $0x30] sm:$0xf] %v330_v40  ;;  %475 = vmatpush1.msra.mxu0 %v430_v41 }
  0x9e   : > { %v345_v42 = vpop.permute.xlu0 %344  ;;  %v285_v43 = vpop.permute.xlu1 %284 }
  0x9f   : > { %v351_v44 = vsel %vm350_vm8, %v345_v42, %v347_v33 }
  0xa0   : > { %356 = vst [vmem:[#allocation2 + $0x30] sm:$0xf0] %v351_v44 }
  0xa2   : > { %v287_v45 = vpop.permute.xlu0 %286  ;;  %v306_v46 = vpop.permute.xlu1 %305  ;;  %v429_v47 = vld [vmem:[#allocation2 + $0x40] sm:$0xff] }
  0xa3   : > { %v290_v48 = vsel %vm288_vm9, %v285_v43, %v287_v45  ;;  %296 = vst.msk [vmem:[#allocation2 + $0x28] sm:$0xf] %vm253_vm0, %v287_v45  ;;  %781 = vmatpush3.msra.mxu1 %v429_v47  ;;  %v428_v49 = vld [vmem:[#allocation2 + $0x38] sm:$0xff] }
  0xa4   : > { %295 = vst [vmem:[#allocation2 + $0x20] sm:$0xf] %v290_v48  ;;  %476 = vmatprep.subr.mxu0 %v428_v49  ;;  %782 = vmatprep.subr.mxu1 %v822_v0 }
  0xa6   : > { %v308_v50 = vpop.permute.xlu0 %307  ;;  %v283_v51 = vpop.permute.xlu1 %282 }
  0xa7   : > { %v311_v52 = vsel %vm309_vm10, %v306_v46, %v308_v50  ;;  %317 = vst.msk [vmem:[#allocation2 + $0x28] sm:$0xf0] %vm275_vm5, %v308_v50  ;;  %v289_v53 = vsel %vm288_vm9, %v283_v51, %v285_v43  ;;  %v427_v54 = vld [vmem:[#allocation2 + $0x30] sm:$0xff] }
  0xa8   : > { %316 = vst [vmem:[#allocation2 + $0x20] sm:$0xf0] %v311_v52  ;;  %294 = vst [vmem:[#allocation2 + $0x18] sm:$0xf] %v289_v53  ;;  %477 = vmatpush1.msra.mxu0 %v427_v54 }
  0xaa   : > { %v304_v55 = vpop.permute.xlu0 %303  ;;  %v264_v56 = vpop.permute.xlu1 %263 }
  0xab   : > { %v310_v57 = vsel %vm309_vm10, %v304_v55, %v306_v46 }
  0xac   : > { %315 = vst [vmem:[#allocation2 + $0x18] sm:$0xf0] %v310_v57 }
  0xae   : > { %v266_v58 = vpop.permute.xlu0 %265  ;;  %v262_v59 = vpop.permute.xlu1 %261  ;;  %v426_v60 = vld [vmem:[#allocation2 + $0x28] sm:$0xff] }
  0xaf   : > { %v269_v61 = vsel %vm267_vm11, %v264_v56, %v266_v58  ;;  %276 = vst.msk [vmem:[#allocation2 + $0x10] sm:$0xf0] %vm275_vm5, %v266_v58  ;;  %v268_v62 = vsel %vm267_vm11, %v262_v59, %v264_v56  ;;  %783 = vmatpush3.msra.mxu1 %v426_v60  ;;  %v425_v63 = vld [vmem:[#allocation2 + $0x20] sm:$0xff] }
  0xb0   : > { %274 = vst [vmem:[#allocation2 + $0x8] sm:$0xf0] %v269_v61  ;;  %273 = vst [vmem:[#allocation2] sm:$0xf0] %v268_v62  ;;  %478 = vmatprep.subr.mxu0 %v425_v63  ;;  %784 = vmatprep.subr.mxu1 %v822_v0  ;;  %v601_v0 = vsub.s32 0, %v600_v7 }
  0xb2   : > { %v602_v12 = vrot.slane %v597_v9, %v601_v0 }
  0xb3   : > { %v424_v1 = vld [vmem:[#allocation2 + $0x18] sm:$0xff] }
  0xb4   : > { %479 = vmatpush1.msra.mxu0 %v424_v1 }
  0xb6   : > { %v423_v2 = vld [vmem:[#allocation2 + $0x10] sm:$0xff] }
  0xb7   : > { %785 = vmatpush3.msra.mxu1 %v423_v2  ;;  %v422_v3 = vld [vmem:[#allocation2 + $0x8] sm:$0xff]  ;;  %v421_v4 = vld [vmem:[#allocation2] sm:$0xff] }
  0xb8   : > { %480 = vmatprep.subr.mxu0 %v422_v3  ;;  %787 = vmatmul.mubr.msk.f32.vlgmr.msra.gmra.mxu1 %vm436_vm12, %v420_v5 }
  0xb9   : > { %481 = vmatpush1.msra.mxu0 %v421_v4 }
  0xba   : > { %765 = vmatmul.mubr.msk.f32.vlgmr.msra.gmra.mxu0 %vm436_vm12, %v420_v5 }
 0x178   : > { %v587_v13 = vpop.f32.mrf.mxu1 }
 0x179   : > { %596 = vst.msk [vmem:[%s237_s13 + $0x8] sm:$0xf] %vm253_vm0, %v587_v13  ;;  %v616_v15 = vmul.f32 %v610_v11, %v587_v13 }
 0x17a   : > { %v516_v16 = vpop.f32.mrf.mxu0  ;;  %v788_v17 = vpop.f32.mrf.mxu1 }
 0x17b   : > { %v614_v18 = vmul.f32 %v602_v12, %v516_v16  ;;  %v628_v23 = vmul.f32 %v616_v15, %v616_v15  ;;  %v620_v27 = vsel %vm253_vm0, %v616_v15, 0.0 }
 0x17c   : > { %v518_v19 = vpop.f32.mrf.mxu0 }
 0x17d   : > { %v626_v20 = vmul.f32 %v614_v18, %v614_v18  ;;  %v593_v21 = vcombine.low %v516_v16, %v518_v19  ;;  %v615_v22 = vmul.f32 %v606_v14, %v518_v19  ;;  %v617_v24 = vsel %vm440_vm4, %v614_v18, 0.0 }
 0x17e   : > { %v632_v31 = vsel %vm253_vm0, %v628_v23, 0.0 }
 0x17f   : > { %595 = vst [vmem:[%s237_s13] sm:$0xff] %v593_v21  ;;  %v618_v25 = vsel %vm440_vm4, %v615_v22, 0.0  ;;  %v627_v26 = vmul.f32 %v615_v22, %v615_v22  ;;  %v629_v29 = vsel %vm440_vm4, %v626_v20, 0.0 }
 0x180   : > { %v619_v28 = vadd.f32 %v618_v25, %v617_v24 }
 0x181   : > { %v630_v30 = vsel %vm440_vm4, %v627_v26, 0.0 }
 0x182   : > { %v621_v32 = vadd.f32 %v620_v27, %v619_v28  ;;  %v631_v33 = vadd.f32 %v630_v30, %v629_v29 }
 0x184   : > { %622 = vadd.xlane.f32.xlu0 %v621_v32  ;;  %v633_v34 = vadd.f32 %v632_v31, %v631_v33 }
 0x186   : > { %634 = vadd.xlane.f32.xlu1 %v633_v34 }
 0x20d   : > { %v623_v35 = vpop.xlane.xlu0 %622 }
 0x20e   : > { %625 = vst.msk [vmem:[%s241_s17] sm:$0xf] %vm624_vm13, %v623_v35 }
 0x20f   : > { %v635_v36 = vpop.xlane.xlu1 %634 }
 0x210   : > { %636 = vst.msk [vmem:[%s245_s22] sm:$0xf] %vm624_vm13, %v635_v36 }
 0x211 PF: > { %s16_s18 = sadd.s32 1, %s820_s18  }
 0x212   : > { %p13_p4 = scmp.ge.s32.totalorder %s16_s18, 4  }
 0x214   :  { %15 = sbr.rel (!%p13_p4) target bundleno = 1 (0x1), region = 86 }

// kernel: residual_block_forward.4
= control target key start
LH: loop header
LB: loop body
LE: loop exit
PB: predicated region body
PF: predicated region fallthrough
CT: control target
= control target key end

     0   :  { %s1007_s24 = smov 0   ;;  %s1107_s0 = inlined_call_operand.vmem [shape: f32[2,4,288], index: 0, kind: input, shape index: {}]   ;;  %s1108_s1 = inlined_call_operand.vmem [shape: f32[4,36], index: 1, kind: input, shape index: {}]   ;;  %s1109_s2 = inlined_call_operand.vmem [shape: f32[4,1], index: 2, kind: input, shape index: {}]   ;;  %s1110_s3 = inlined_call_operand.vmem [shape: f32[4,1], index: 3, kind: input, shape index: {}]   ;;  %s1111_s4 = inlined_call_operand.vmem [shape: f32[1,288], index: 4, kind: input, shape index: {}]   ;;  %s1112_s5 = inlined_call_operand.vmem [shape: f32[2,4,288], index: 5, kind: output, shape index: {0}]   ;;  %s1113_s6 = inlined_call_operand.vmem [shape: f32[2,4,1], index: 6, kind: output, shape index: {1}]   ;;  %s1114_s7 = inlined_call_operand.vmem [shape: f32[2,4,1], index: 7, kind: output, shape index: {2}]  }
   0x1 LB: > { %s882_s25 = sadd.s32 4294967295, %s952_s24   ;;  %p886_p0 = scmp.ge.s32.totalorder %s952_s24, 1  ;;  %s952_s24 = sphi %s1007_s24, %s18_s24  }
   0x2   : > { %p242_p1 = scmp.lt.s32.totalorder %s952_s24, 3 }
   0x4   : > { %p243_p2 = pnand %p886_p0, %p242_p1 }
   0x5   : > { %p282_p3 = scmp.lt.s32.totalorder (!%p243_p2), %s882_s25, 1  ;;  %s957_s13 = smov (!%p243_p2), 19  }
   0x6   : > { %246 = sbr.rel (%p243_p2) target bundleno = 789 (0x315), region = 40  ;;  %s958_s14 = smov (!%p243_p2), 90  }
   0x7   : > { %s959_s15 = smov (!%p243_p2), 92   ;;  %s960_s16 = smov (!%p243_p2), 91  }
   0x8   : > { %s961_s17 = smov (!%p243_p2), 109   ;;  %s962_s18 = smov (!%p243_p2), 126  }
   0x9   : > { %s963_s19 = smov (!%p243_p2), 108   ;;  %s964_s20 = smov (!%p243_p2), 110  }
   0xa   : > { %s965_s21 = smov (!%p243_p2), 127  }
   0xb   : > { %v302_v0 = vld [vmem:[%s1109_s2] sm:$0xf]  ;;  %v954_v1 = vmov 0   ;;  %v955_v3 = vmov 0.0   ;;  %v956_v4 = vmov 839922192   ;;  %v310_v6 = vlaneseq }
   0xc   : > { %939 = vset.pattern.permute.xlu0 %v954_v1  ;;  %v317_v2 = vld [vmem:[%s1110_s3] sm:$0xf]  ;;  %353 = vst [vmem:[#allocation2] sm:$0xff] %v955_v3  ;;  %904 = vmatprep.subr.mxu1 %v955_v3  ;;  %v308_v5 = vunpack.c.l.s4 %v956_v4  ;;  %s1116_s25 = smov (!%p282_p3, %s882_s25), 1  ;;  %vm354_vm0 = vcmask 568320   ;;  %vm368_vm1 = vcmask 1043608  }
   0xd   : > { %305 = vperm.xlu0 %939, %v302_v0   ;;  %642 = vmatprep.mubr.f32.mxu0 %v955_v3  ;;  %v1026_v8 = vshrl.u32 %v310_v6, 7  ;;  %s917_s30 = smul.u32 12, %s1116_s25  ;;  %v334_v13 = vld [vmem:[%s1111_s4] sm:$0x7]  ;;  %355 = vst.msk [vmem:[#allocation2 + $0x8] sm:$0xf] %vm354_vm0, %v955_v3 }
   0xe   : > { %v309_v7 = vunpack.c.0.s8 %v308_v5  ;;  %vm369_vm2 = vcmask 1047556   ;;  %vm363_vm3 = vcmask 154624   ;;  %vm372_vm5 = vcmask 412672  }
   0xf   : > { %s286_s10 = scalar_lea.vmem %s1107_s0, %s917_s30  ;;  %v338_v10 = vsub.s32 0, %v1026_v8  ;;  %v342_v11 = vsub.s32 1, %v1026_v8  ;;  %v346_v26 = vsub.s32 2, %v1026_v8  ;;  %vm370_vm4 = vmor %vm369_vm2, %vm368_vm1  ;;  %vm381_vm6 = vcmask 257024   ;;  %s291_s8 = scalar_lea.vmem %s1112_s5, %s917_s30 }
  0x10   : > { %v312_v9 = vsub.s32 %v309_v7, %v1026_v8  ;;  %v300_v15 = vld [vmem:[%s286_s10] sm:$0xff]  ;;  %v301_v16 = vld [vmem:[%s286_s10 + $0x8] sm:$0xf]  ;;  %vm966_vm7 = vmmov 0   ;;  %vm568_vm8 = vcmask 1043456   ;;  %vm539_vm9 = vcmask 736256  }
  0x11   : > { %320 = vperm.xlu0 %939, %v317_v2   ;;  %v339_v17 = vrot.slane %v334_v13, %v338_v10  ;;  %v343_v18 = vrot.slane %v334_v13, %v342_v11  ;;  %v347_v30 = vrot.slane %v334_v13, %v346_v26  ;;  %914 = vmatprep.mubr.msk.f32.mxu1 %vm966_vm7, %v955_v3  ;;  %vm403_vm10 = vcmask 261124   ;;  %s889_s30 = sshll.u32 %s1116_s25, 2 }
  0x12   : > { %vm519_vm11 = vcmask 744448   ;;  %vm478_vm12 = vcmask 883712   ;;  %vm498_vm13 = vcmask 752640   ;;  %vm437_vm14 = vcmask 900096   ;;  %s295_s11 = scalar_lea.vmem %s1113_s6, %s889_s30 }
  0x13   : > { %v349_v25 = vcombine.low %v339_v17, %v343_v18  ;;  %vm457_vm15 = vcmask 891904   ;;  %vm416_vm0 = vcmask 1031168   ;;  %vm395_vm1 = vcmask 1039360  }
  0x14   : > { %vm564_vm2 = vcmask 293888  }
  0x88   : > { %v306_v12 = vpop.permute.xlu0 %305 }
  0x89   : > { %v313_v14 = vrot.slane %v306_v12, %v312_v9 }
  0x8b   : > { %v315_v20 = vmul.f32 %v313_v14, %v300_v15  ;;  %v316_v21 = vmul.f32 %v313_v14, %v301_v16 }
  0x8c   : > { %v321_v19 = vpop.permute.xlu0 %320 }
  0x8d   : > { %v328_v22 = vrot.slane %v321_v19, %v312_v9 }
  0x8f   : > { %v330_v23 = vadd.f32 %v328_v22, %v315_v20  ;;  %v331_v24 = vadd.f32 %v328_v22, %v316_v21 }
  0x91   : > { %v332_v27 = vmax.f32 %v330_v23, 0.0  ;;  %v333_v28 = vmax.f32 %v331_v24, 0.0 }
  0x93   : > { %v351_v29 = vmul.f32 %v349_v25, %v332_v27  ;;  %v352_v31 = vmul.f32 %v347_v30, %v333_v28 }
  0x95   : > { %358 = vrot.lane.b32.xlu1 %v351_v29, %s957_s13 }
  0x99   : > { %360 = vrot.lane.b32.xlu1 %v352_v31, %s957_s13 }
 0x107   : > { %v359_v32 = vpop.permute.xlu1 %358 }
 0x108   : > { %v362_v33 = vrot.slane %v359_v32, 4 }
 0x10a   : > { %v364_v34 = vsel %vm363_vm3, %v362_v33, %v359_v32 }
 0x10b   : > { %371 = vst.msk [vmem:[#allocation2] sm:$0xff] %vm370_vm4, %v364_v34  ;;  %v361_v35 = vpop.permute.xlu1 %360 }
 0x10c   : > { %v365_v36 = vsel %vm363_vm3, %v362_v33, %v361_v35  ;;  %vm752_vm3 = vcmask 3072  }
 0x10d   : > { %373 = vst.msk [vmem:[#allocation2 + $0x8] sm:$0xf] %vm372_vm5, %v365_v36 }
 0x112   : > { %v528_v37 = vld [vmem:[#allocation2] sm:$0xff] }
 0x113   : > { %533 = vrot.lane.b32.xlu0 %v528_v37, %s958_s14  ;;  %v532_v38 = vcombine.high %v528_v37, %v528_v37  ;;  %379 = vst [vmem:[#allocation3] sm:$0xf] %v528_v37  ;;  %v511_v45 = vcombine.low %v528_v37, %v528_v37 }
 0x114   : > { %v529_v39 = vld [vmem:[#allocation2 + $0x8] sm:$0xf] }
 0x115   : > { %537 = vrot.lane.b32.xlu1 %v529_v39, %s958_s14  ;;  %380 = vst [vmem:[#allocation3 + $0x8] sm:$0xf] %v532_v38  ;;  %v488_v40 = vld [vmem:[#allocation2 + $0x8] sm:$0xf] }
 0x116   : > { %v375_v41 = vld [vmem:[#allocation2 + $0x8] sm:$0xf] }
 0x117   : > { %496 = vrot.lane.b32.xlu0 %v488_v40, %s959_s15  ;;  %382 = vst.msk [vmem:[#allocation3 + $0x10] sm:$0xf] %vm381_vm6, %v375_v41  ;;  %v447_v42 = vld [vmem:[#allocation2 + $0x8] sm:$0xf] }
 0x118   : > { %v406_v43 = vld [vmem:[#allocation2 + $0x8] sm:$0xf] }
 0x119   : > { %515 = vrot.lane.b32.xlu1 %v528_v37, %s960_s16  ;;  %v942_v44 = vld [vmem:[#allocation2 + $0x8] ss:$0 sps:$4 sm:$0xff]  }
 0x11a   : > { %v943_v46 = vld [vmem:[#allocation2 + $0x8] ss:$0 sps:$4 sm:$0xff]  }
 0x11b   : > { %455 = vrot.lane.b32.xlu0 %v447_v42, %s961_s17  ;;  %v944_v47 = vld [vmem:[#allocation2 + $0x8] ss:$0 sps:$4 sm:$0xff]  }
 0x11c   : > { %v945_v48 = vld [vmem:[#allocation2 + $0x8] ss:$0 sps:$4 sm:$0xff]  }
 0x11d   : > { %492 = vrot.lane.b32.xlu1 %v528_v37, %s959_s15 }
 0x11f   : > { %414 = vrot.lane.b32.xlu0 %v406_v43, %s962_s18 }
 0x121   : > { %474 = vrot.lane.b32.xlu1 %v528_v37, %s963_s19 }
 0x123   : > { %535 = vrot.lane.b32.xlu0 %v532_v38, %s958_s14  ;;  %s299_s14 = scalar_lea.vmem %s1114_s7, %s889_s30 }
 0x125   : > { %451 = vrot.lane.b32.xlu1 %v528_v37, %s961_s17 }
 0x127   : > { %517 = vrot.lane.b32.xlu0 %v942_v44, %s960_s16  ;;  %v548_v44 = vld [vmem:[%s1108_s1] sm:$0xf] }
 0x129   : > { %433 = vrot.lane.b32.xlu1 %v528_v37, %s964_s20 }
 0x12b   : > { %513 = vrot.lane.b32.xlu0 %v511_v45, %s960_s16 }
 0x12d   : > { %410 = vrot.lane.b32.xlu1 %v528_v37, %s962_s18 }
 0x12f   : > { %476 = vrot.lane.b32.xlu0 %v943_v46, %s963_s19 }
 0x131   : > { %391 = vrot.lane.b32.xlu1 %v528_v37, %s965_s21 }
 0x133   : > { %472 = vrot.lane.b32.xlu0 %v511_v45, %s963_s19 }
 0x135   : > { %494 = vrot.lane.b32.xlu1 %v532_v38, %s959_s15 }
 0x137   : > { %435 = vrot.lane.b32.xlu0 %v944_v47, %s964_s20 }
 0x139   : > { %453 = vrot.lane.b32.xlu1 %v532_v38, %s961_s17 }
 0x13b   : > { %431 = vrot.lane.b32.xlu0 %v511_v45, %s964_s20 }
 0x13d   : > { %412 = vrot.lane.b32.xlu1 %v532_v38, %s962_s18 }
 0x13f   : > { %393 = vrot.lane.b32.xlu0 %v945_v48, %s965_s21 }
 0x141   : > { %389 = vrot.lane.b32.xlu1 %v511_v45, %s965_s21  ;;  %v725_v45 = vld [vmem:[%s1111_s4] sm:$0x7] }
 0x142   : > { %v738_v46 = vrot.slane %v725_v45, %v346_v26  ;;  %v730_v47 = vrot.slane %v725_v45, %v338_v10 }
 0x185   : > { %v534_v49 = vpop.permute.xlu0 %533 }
 0x187   : > { %v538_v50 = vpop.permute.xlu1 %537 }
 0x188   : > { %547 = vst.msk [vmem:[#allocation3 + $0x70] sm:$0xf] %vm381_vm6, %v538_v50 }
 0x189   : > { %v497_v51 = vpop.permute.xlu0 %496 }
 0x18a   : > { %506 = vst.msk [vmem:[#allocation3 + $0x58] sm:$0xf] %vm381_vm6, %v497_v51 }
 0x18b   : > { %v516_v52 = vpop.permute.xlu1 %515 }
 0x18d   : > { %v456_v53 = vpop.permute.xlu0 %455 }
 0x18e   : > { %465 = vst.msk [vmem:[#allocation3 + $0x40] sm:$0xf] %vm381_vm6, %v456_v53 }
 0x18f   : > { %v493_v54 = vpop.permute.xlu1 %492  ;;  %v563_v55 = vld [vmem:[#allocation3 + $0x70] sm:$0xf] }
 0x190   : > { %905 = vmatpush3.msk.msra.mxu1 %vm568_vm8, %v563_v55 }
 0x191   : > { %v1054_v56 = vpop.permute.xlu0 %414  ;;  %906 = vmatprep.subr.mxu1 %v955_v3 }
 0x192   : > { %424 = vst.msk [vmem:[#allocation3 + $0x28] sm:$0xf] %vm381_vm6, %v1054_v56 }
 0x193   : > { %v475_v57 = vpop.permute.xlu1 %474 }
 0x195   : > { %v536_v58 = vpop.permute.xlu0 %535 }
 0x196   : > { %v540_v59 = vsel %vm539_vm9, %v534_v49, %v536_v58  ;;  %v541_v60 = vsel %vm539_vm9, %v536_v58, %v538_v50  ;;  %v734_v49 = vrot.slane %v725_v45, %v342_v11 }
 0x197   : > { %545 = vst [vmem:[#allocation3 + $0x60] sm:$0xf] %v540_v59  ;;  %546 = vst [vmem:[#allocation3 + $0x68] sm:$0xf] %v541_v60  ;;  %v452_v61 = vpop.permute.xlu1 %451 }
 0x199   : > { %v518_v62 = vpop.permute.xlu0 %517 }
 0x19a   : > { %v521_v63 = vsel %vm519_vm11, %v516_v52, %v518_v62  ;;  %527 = vst.msk [vmem:[#allocation3 + $0x58] sm:$0xf0] %vm403_vm10, %v518_v62 }
 0x19b   : > { %526 = vst [vmem:[#allocation3 + $0x50] sm:$0xf0] %v521_v63  ;;  %v434_v0 = vpop.permute.xlu1 %433 }
 0x19d   : > { %v514_v1 = vpop.permute.xlu0 %513 }
 0x19e   : > { %v520_v2 = vsel %vm519_vm11, %v514_v1, %v516_v52  ;;  %v562_v4 = vld [vmem:[#allocation3 + $0x68] sm:$0xf]  ;;  %v561_v5 = vld [vmem:[#allocation3 + $0x60] sm:$0xf] }
 0x19f   : > { %525 = vst [vmem:[#allocation3 + $0x48] sm:$0xf0] %v520_v2  ;;  %v411_v6 = vpop.permute.xlu1 %410  ;;  %891 = vmatprep.subr.msk.mxu0 %vm568_vm8, %v562_v4 }
 0x1a0   : > { %892 = vmatpush1.msk.msra.mxu0 %vm568_vm8, %v561_v5 }
 0x1a1   : > { %v477_v7 = vpop.permute.xlu0 %476  ;;  %v560_v9 = vld [vmem:[#allocation3 + $0x58] sm:$0xff] }
 0x1a2   : > { %v480_v12 = vsel %vm478_vm12, %v475_v57, %v477_v7  ;;  %486 = vst.msk [vmem:[#allocation3 + $0x40] sm:$0xf0] %vm403_vm10, %v477_v7  ;;  %907 = vmatpush3.msra.mxu1 %v560_v9 }
 0x1a3   : > { %485 = vst [vmem:[#allocation3 + $0x38] sm:$0xf0] %v480_v12  ;;  %v392_v13 = vpop.permute.xlu1 %391  ;;  %908 = vmatprep.subr.mxu1 %v955_v3 }
 0x1a5   : > { %v473_v14 = vpop.permute.xlu0 %472 }
 0x1a6   : > { %v479_v15 = vsel %vm478_vm12, %v473_v14, %v475_v57 }
 0x1a7   : > { %484 = vst [vmem:[#allocation3 + $0x30] sm:$0xf0] %v479_v15  ;;  %v495_v16 = vpop.permute.xlu1 %494 }
 0x1a8   : > { %v499_v17 = vsel %vm498_vm13, %v493_v54, %v495_v16  ;;  %v500_v18 = vsel %vm498_vm13, %v495_v16, %v497_v51 }
 0x1a9   : > { %504 = vst [vmem:[#allocation3 + $0x48] sm:$0xf] %v499_v17  ;;  %505 = vst [vmem:[#allocation3 + $0x50] sm:$0xf] %v500_v18  ;;  %v436_v19 = vpop.permute.xlu0 %435  ;;  %v557_v20 = vld [vmem:[#allocation3 + $0x40] sm:$0xff] }
 0x1aa   : > { %v439_v21 = vsel %vm437_vm14, %v434_v0, %v436_v19  ;;  %445 = vst.msk [vmem:[#allocation3 + $0x28] sm:$0xf0] %vm403_vm10, %v436_v19  ;;  %909 = vmatpush3.msra.mxu1 %v557_v20 }
 0x1ab   : > { %444 = vst [vmem:[#allocation3 + $0x20] sm:$0xf0] %v439_v21  ;;  %v454_v22 = vpop.permute.xlu1 %453  ;;  %910 = vmatprep.subr.mxu1 %v955_v3 }
 0x1ac   : > { %v458_v23 = vsel %vm457_vm15, %v452_v61, %v454_v22  ;;  %v459_v24 = vsel %vm457_vm15, %v454_v22, %v456_v53 }
 0x1ad   : > { %463 = vst [vmem:[#allocation3 + $0x30] sm:$0xf] %v458_v23  ;;  %464 = vst [vmem:[#allocation3 + $0x38] sm:$0xf] %v459_v24  ;;  %v432_v25 = vpop.permute.xlu0 %431 }
 0x1ae   : > { %v438_v27 = vsel %vm437_vm14, %v432_v25, %v434_v0 }
 0x1af   : > { %443 = vst [vmem:[#allocation3 + $0x18] sm:$0xf0] %v438_v27  ;;  %v413_v28 = vpop.permute.xlu1 %412 }
 0x1b0   : > { %v417_v29 = vsel %vm416_vm0, %v411_v6, %v413_v28  ;;  %v418_v30 = vsel %vm416_vm0, %v413_v28, %v1054_v56  ;;  %v559_v31 = vld [vmem:[#allocation3 + $0x50] sm:$0xff]  ;;  %v558_v32 = vld [vmem:[#allocation3 + $0x48] sm:$0xff] }
 0x1b1   : > { %422 = vst [vmem:[#allocation3 + $0x18] sm:$0xf] %v417_v29  ;;  %423 = vst [vmem:[#allocation3 + $0x20] sm:$0xf] %v418_v30  ;;  %602 = vmatprep.subr.mxu0 %v559_v31  ;;  %v394_v33 = vpop.permute.xlu0 %393  ;;  %v554_v34 = vld [vmem:[#allocation3 + $0x28] sm:$0xff] }
 0x1b2   : > { %v397_v35 = vsel %vm395_vm1, %v392_v13, %v394_v33  ;;  %404 = vst.msk [vmem:[#allocation3 + $0x10] sm:$0xf0] %vm403_vm10, %v394_v33  ;;  %603 = vmatpush1.msra.mxu0 %v558_v32  ;;  %911 = vmatpush3.msra.mxu1 %v554_v34 }
 0x1b3   : > { %402 = vst [vmem:[#allocation3 + $0x8] sm:$0xf0] %v397_v35  ;;  %v390_v36 = vpop.permute.xlu1 %389  ;;  %912 = vmatprep.subr.mxu1 %v955_v3 }
 0x1b4   : > { %v396_v37 = vsel %vm395_vm1, %v390_v36, %v392_v13  ;;  %v556_v38 = vld [vmem:[#allocation3 + $0x38] sm:$0xff]  ;;  %v555_v39 = vld [vmem:[#allocation3 + $0x30] sm:$0xff] }
 0x1b5   : > { %401 = vst [vmem:[#allocation3] sm:$0xf0] %v396_v37  ;;  %604 = vmatprep.subr.mxu0 %v556_v38 }
 0x1b6   : > { %605 = vmatpush1.msra.mxu0 %v555_v39 }
 0x1b8   : > { %v553_v40 = vld [vmem:[#allocation3 + $0x20] sm:$0xff]  ;;  %v552_v41 = vld [vmem:[#allocation3 + $0x18] sm:$0xff] }
 0x1b9   : > { %606 = vmatprep.subr.mxu0 %v553_v40  ;;  %v551_v42 = vld [vmem:[#allocation3 + $0x10] sm:$0xff] }
 0x1ba   : > { %607 = vmatpush1.msra.mxu0 %v552_v41  ;;  %913 = vmatpush3.msra.mxu1 %v551_v42  ;;  %v550_v43 = vld [vmem:[#allocation3 + $0x8] sm:$0xff] }
 0x1bb   : > { %608 = vmatprep.subr.mxu0 %v550_v43  ;;  %915 = vmatmul.mubr.msk.f32.vlgmr.msra.gmra.mxu1 %vm564_vm2, %v548_v44 }
 0x1bc   : > { %v549_v3 = vld [vmem:[#allocation3] sm:$0xff] }
 0x1bd   : > { %609 = vmatpush1.msra.mxu0 %v549_v3 }
 0x1be   : > { %893 = vmatmul.mubr.msk.f32.vlgmr.msra.gmra.mxu0 %vm564_vm2, %v548_v44 }
 0x27b   : > { %v715_v48 = vpop.f32.mrf.mxu1 }
 0x27c   : > { %724 = vst.msk [vmem:[%s291_s8 + $0x8] sm:$0xf] %vm381_vm6, %v715_v48  ;;  %v744_v50 = vmul.f32 %v738_v46, %v715_v48 }
 0x27d   : > { %v916_v51 = vpop.f32.mrf.mxu1 }
 0x27e   : > { %v644_v52 = vpop.f32.mrf.mxu0  ;;  %v756_v58 = vmul.f32 %v744_v50, %v744_v50  ;;  %v748_v60 = vsel %vm381_vm6, %v744_v50, 0.0 }
 0x27f   : > { %v742_v53 = vmul.f32 %v730_v47, %v644_v52 }
 0x280   : > { %v646_v54 = vpop.f32.mrf.mxu0  ;;  %v760_v62 = vsel %vm381_vm6, %v756_v58, 0.0 }
 0x281   : > { %v754_v55 = vmul.f32 %v742_v53, %v742_v53  ;;  %v721_v56 = vcombine.low %v644_v52, %v646_v54  ;;  %v743_v57 = vmul.f32 %v734_v49, %v646_v54  ;;  %v745_v26 = vsel %vm568_vm8, %v742_v53, 0.0 }
 0x283   : > { %723 = vst [vmem:[%s291_s8] sm:$0xff] %v721_v56  ;;  %v746_v10 = vsel %vm568_vm8, %v743_v57, 0.0  ;;  %v755_v59 = vmul.f32 %v743_v57, %v743_v57  ;;  %v757_v11 = vsel %vm568_vm8, %v754_v55, 0.0 }
 0x284   : > { %v747_v8 = vadd.f32 %v746_v10, %v745_v26 }
 0x285   : > { %v758_v61 = vsel %vm568_vm8, %v755_v59, 0.0 }
 0x286   : > { %v749_v63 = vadd.f32 %v748_v60, %v747_v8  ;;  %v759_v0 = vadd.f32 %v758_v61, %v757_v11 }
 0x288   : > { %750 = vadd.xlane.f32.xlu0 %v749_v63  ;;  %v761_v1 = vadd.f32 %v760_v62, %v759_v0 }
 0x28a   : > { %762 = vadd.xlane.f32.xlu1 %v761_v1 }
 0x311   : > { %v751_v2 = vpop.xlane.xlu0 %750 }
 0x312   : > { %753 = vst.msk [vmem:[%s295_s11] sm:$0xf] %vm752_vm3, %v751_v2 }
 0x313   : > { %v763_v4 = vpop.xlane.xlu1 %762 }
 0x314   : > { %764 = vst.msk [vmem:[%s299_s14] sm:$0xf] %vm752_vm3, %v763_v4 }
 0x315 PF: > { %s18_s24 = sadd.s32 1, %s952_s24  }
 0x316   : > { %p15_p4 = scmp.ge.s32.totalorder %s18_s24, 4  }
 0x318   :  { %17 = sbr.rel (!%p15_p4) target bundleno = 1 (0x1), region = 94 }

</bundles_post_ra>
